<compile_context>
chip_gen: v7x
topology: tpu7x:2x2x1
jax: 0.10.0
libtpu: 0.0.40
codegen_flags: <defaults>
</compile_context>

<pallas_src>
import functools
import math

import jax
import jax.numpy as jnp
from jax.experimental import pallas as pl
from jax.experimental.pallas import tpu as pltpu


def _round_up(v, m):
    return (v + m - 1) // m * m


def _vmem_budget_bytes():
    """~70% of physical per-core VMEM; fall back to v7x's 64 MiB (smallest)."""
    try:
        cap = int(pltpu.get_tpu_info().vmem_capacity_bytes)
    except Exception:
        cap = 64 * 1024 * 1024
    return int(cap * 0.7)


@functools.partial(
    jax.jit,
    static_argnames=("stride", "padding", "dilation", "relu", "bn", "target_rows"))
def basic_conv_forward(x_nchw, weight, gamma, beta, running_mean, running_var,
                       conv_bias=None, *, stride=1, padding=0, dilation=1,
                       eps=1e-5, relu=True, bn=True, target_rows=1024):
    """BasicConv forward: Conv2d + BatchNorm2d(eval) + ReLU.

    x_nchw: (N, C_in, H, W); weight: (C_out, C_in, KH, KW). Output is NCHW.
    """
    c_out, c_in_w, kh, kw = weight.shape
    n, c_in, h, w_in = x_nchw.shape
    if c_in != c_in_w:
        raise NotImplementedError("groups > 1 is not supported")  # TODO(synk)

    h_out = (h + 2 * padding - dilation * (kh - 1) - 1) // stride + 1
    w_out = (w_in + 2 * padding - dilation * (kw - 1) - 1) // stride + 1
    w_padded = w_in + 2 * padding                   # padded image width
    c_out_pad = _round_up(c_out, 128)               # lane-dense output channels
    k_dim = kh * kw * c_in                          # fused matmul reduction depth

    # ---- row tiling over output H (VMEM-budget aware) -------------------------
    step = 8 // math.gcd(w_padded, 8)               # keeps (th * w_padded) % 8 == 0

    def vmem_est(th_):
        m_tile_ = th_ * w_padded
        flat_ = (stride * (m_tile_ - 1) + (kh - 1) * dilation * w_padded
                 + (kw - 1) * dilation + 1)
        m_in_ = pl.cdiv(flat_, w_padded) * w_padded
        x_blk = 2 * _round_up(m_in_, 16) * _round_up(c_in, 128) * 2   # dbl-buffered bf16
        o_blk = 2 * _round_up(m_tile_, 16) * c_out_pad * 2            # dbl-buffered bf16
        im_scr = _round_up(m_tile_, 16) * _round_up(k_dim, 128) * 2   # im2col scratch
        w_blk = 2 * _round_up(k_dim, 16) * c_out_pad * 2              # weights
        return x_blk + o_blk + im_scr + w_blk + (1 << 20)             # + slack

    budget = _vmem_budget_bytes()
    th_cap = max(1, target_rows // w_padded)
    th = max(step, (th_cap // step) * step)
    th = min(th, _round_up(h_out, step))
    while th > step and vmem_est(th) > budget:
        th -= step
    ht = pl.cdiv(h_out, th)
    m_tile = th * w_padded                          # output rows per grid step

    # ---- halo: input rows needed per tile so every in-kernel slice is in range -
    flat_needed = (stride * (m_tile - 1) + (kh - 1) * dilation * w_padded
                   + (kw - 1) * dilation + 1)
    th_in = pl.cdiv(flat_needed, w_padded)          # input rows per tile (with halo)
    m_in = th_in * w_padded
    rows_total = max((ht - 1) * th * stride + th_in, h + 2 * padding)

    # ---- glue: NCHW -> NHWC, zero pad, halo-duplicate row tiles, bf16 ----------
    x_nhwc = jnp.transpose(x_nchw, (0, 2, 3, 1))
    xp = jnp.pad(x_nhwc, ((0, 0),
                          (padding, rows_total - h - padding),
                          (padding, padding),
                          (0, 0)))
    row_idx = (jnp.arange(ht) * (th * stride))[:, None] + jnp.arange(th_in)[None, :]
    x_tiles = xp[:, row_idx]                                   # (N, ht, th_in, W_pad, C_in)
    x_tiles = x_tiles.reshape(n, ht, m_in, c_in).astype(jnp.bfloat16)

    # ---- fold BN (inference) into weight / bias; pad C_out lane-dense ----------
    if bn:
        scale = gamma.astype(jnp.float32) / jnp.sqrt(
            running_var.astype(jnp.float32) + eps)
        shift = beta.astype(jnp.float32) - running_mean.astype(jnp.float32) * scale
    else:
        scale = jnp.ones((c_out,), jnp.float32)
        shift = jnp.zeros((c_out,), jnp.float32)
    if conv_bias is not None:
        shift = shift + conv_bias.astype(jnp.float32) * scale

    w_folded = weight.astype(jnp.float32) * scale[:, None, None, None]    # (O,I,KH,KW)
    w_mat = jnp.transpose(w_folded, (2, 3, 1, 0)).reshape(k_dim, c_out)   # (KH*KW*C_in, O)
    w_mat = jnp.pad(w_mat, ((0, 0), (0, c_out_pad - c_out))).astype(jnp.bfloat16)
    bias = jnp.pad(shift.reshape(1, c_out),
                   ((0, 0), (0, c_out_pad - c_out))).astype(jnp.float32)

    # ---- fused conv + BN + ReLU kernel -----------------------------------------
    # Flat-index trick: output pixel m = h_local * W_pad + w of this row tile and
    # tap (ki, kj) reads input flat offset ki*dil*W_pad + kj*dil + stride*m of the
    # tile's own (halo-extended) input block; columns with w >= w_out are garbage
    # and are cropped by the wrapper.
    def kernel(x_ref, w_ref, b_ref, o_ref, im_ref):
        # Pack all kh*kw taps into the lane-packed im2col scratch (lanes [0, K)),
        # then issue ONE K = C_in*KH*KW matmul — no VMEM accumulator RMW.
        for t in range(kh * kw):
            ki, kj = divmod(t, kw)
            off = ki * dilation * w_padded + kj * dilation
            if stride == 1:
                a = x_ref[pl.ds(off, m_tile), :]
            else:
                a = x_ref[pl.ds(off, m_tile, stride=stride), :]
            im_ref[:, t * c_in:(t + 1) * c_in] = a
        y = jnp.dot(im_ref[...], w_ref[...], preferred_element_type=jnp.float32)
        y = y + b_ref[...]
        if relu:
            y = jnp.maximum(y, 0.0)
        o_ref[...] = y.astype(o_ref.dtype)          # bf16 writeback

    flops = 2 * n * ht * m_tile * k_dim * c_out_pad
    bytes_accessed = (n * ht * m_in * c_in * 2          # input tiles (bf16)
                      + k_dim * c_out_pad * 2           # weights (bf16)
                      + c_out_pad * 4                   # bias (f32)
                      + n * ht * m_tile * c_out_pad * 2)  # output (bf16)
    vmem_limit = int(min(budget, max(2 * vmem_est(th), 16 * 1024 * 1024)))

    out_flat = pl.pallas_call(
        kernel,
        out_shape=jax.ShapeDtypeStruct((n, ht * m_tile, c_out_pad), jnp.bfloat16),
        grid_spec=pltpu.PrefetchScalarGridSpec(
            num_scalar_prefetch=0,
            grid=(n, ht),
            in_specs=[
                pl.BlockSpec((None, None, m_in, c_in), lambda b, i: (b, i, 0, 0)),
                # NOTE: weight/bias index_maps are constant; pl.Buffered(1) would
                # shave one redundant copy but is skipped for maximum portability.
                pl.BlockSpec((k_dim, c_out_pad), lambda b, i: (0, 0)),
                pl.BlockSpec((1, c_out_pad), lambda b, i: (0, 0)),
            ],
            out_specs=pl.BlockSpec((None, m_tile, c_out_pad), lambda b, i: (b, i, 0)),
            scratch_shapes=[pltpu.VMEM((m_tile, k_dim), jnp.bfloat16)],
        ),
        compiler_params=pltpu.CompilerParams(
            dimension_semantics=("parallel", "parallel"),
            vmem_limit_bytes=vmem_limit),
        cost_estimate=pl.CostEstimate(flops=flops, transcendentals=0,
                                      bytes_accessed=bytes_accessed),
    )(x_tiles, w_mat, bias)

    out = out_flat.reshape(n, ht * th, w_padded, c_out_pad)
    out = out[:, :h_out, :w_out, :c_out]               # drop garbage rows/cols/channels
    return jnp.transpose(out, (0, 3, 1, 2)).astype(x_nchw.dtype)


# ----------------------------- references --------------------------------------
def _reference_f32(x, weight, gamma, beta, mean, var, *, stride, padding,
                   dilation, eps=1e-5):
    y = jax.lax.conv_general_dilated(
        x.astype(jnp.float32), weight.astype(jnp.float32),
        window_strides=(stride, stride),
        padding=((padding, padding), (padding, padding)),
        rhs_dilation=(dilation, dilation),
        dimension_numbers=("NCHW", "OIHW", "NCHW"),
        precision=jax.lax.Precision.HIGHEST)
    s = (gamma / jnp.sqrt(var + eps)).reshape(1, -1, 1, 1)
    b = (beta - mean * gamma / jnp.sqrt(var + eps)).reshape(1, -1, 1, 1)
    return jnp.maximum(y * s + b, 0.0)


def _reference_bf16_matched(x, weight, gamma, beta, mean, var, *, stride,
                            padding, dilation, eps=1e-5):
    """Mirrors the kernel's precision: bf16 activations / BN-folded bf16 weights,
    f32 accumulation + f32 bias/ReLU epilogue, bf16 output rounding."""
    scale = gamma / jnp.sqrt(var + eps)
    shift = beta - mean * scale
    w_f = (weight.astype(jnp.float32) * scale[:, None, None, None]
           ).astype(jnp.bfloat16).astype(jnp.float32)
    x_b = x.astype(jnp.bfloat16).astype(jnp.float32)
    y = jax.lax.conv_general_dilated(
        x_b, w_f, window_strides=(stride, stride),
        padding=((padding, padding), (padding, padding)),
        rhs_dilation=(dilation, dilation),
        dimension_numbers=("NCHW", "OIHW", "NCHW"),
        precision=jax.lax.Precision.HIGHEST)
    y = jnp.maximum(y + shift.reshape(1, -1, 1, 1), 0.0)
    return y.astype(jnp.bfloat16).astype(jnp.float32)


if __name__ == "__main__":
    # BasicConv(in_planes=4, out_planes=8, kernel_size=3, stride=1, padding=1)
    N, C_IN, C_OUT, H, W, KS = 2, 4, 8, 16, 16, 3
    STRIDE, PAD, DIL = 1, 1, 1

    key = jax.random.PRNGKey(0)
    kx, kw_, kg, kb, km, kv = jax.random.split(key, 6)

    x = jax.random.normal(kx, (N, C_IN, H, W), dtype=jnp.float32)
    fan_in = C_IN * KS * KS
    weight = jax.random.normal(kw_, (C_OUT, C_IN, KS, KS), dtype=jnp.float32) / fan_in ** 0.5
    gamma = 1.0 + 0.1 * jax.random.normal(kg, (C_OUT,), dtype=jnp.float32)
    beta = 0.1 * jax.random.normal(kb, (C_OUT,), dtype=jnp.float32)
    running_mean = 0.1 * jax.random.normal(km, (C_OUT,), dtype=jnp.float32)
    running_var = jnp.abs(1.0 + 0.1 * jax.random.normal(kv, (C_OUT,), dtype=jnp.float32))

    out = basic_conv_forward(x, weight, gamma, beta, running_mean, running_var,
                             stride=STRIDE, padding=PAD, dilation=DIL)
    out = jax.block_until_ready(out)
    assert out.shape == (N, C_OUT, H, W), out.shape

    ref_q = _reference_bf16_matched(x, weight, gamma, beta, running_mean, running_var,
                                    stride=STRIDE, padding=PAD, dilation=DIL)
    ref_f = _reference_f32(x, weight, gamma, beta, running_mean, running_var,
                           stride=STRIDE, padding=PAD, dilation=DIL)
    err_q = float(jnp.max(jnp.abs(out - ref_q)))   # same quantization, order-only diffs
    err_f = float(jnp.max(jnp.abs(out - ref_f)))   # bf16 input/weight/output rounding
    assert err_q < 5e-2, ("bf16-matched reference mismatch", err_q)
    assert err_f < 1e-1, ("f32 reference mismatch", err_f)
    print("KERNEL_OK")
</pallas_src>

<mosaic_0001>
module attributes {stable_mosaic.version = 11 : i64} {
  func.func @kernel(%arg0: i32, %arg1: i32, %arg2: memref<1x1x342x4xbf16, #tpu.memory_space<vmem>>, %arg3: memref<36x128xbf16, #tpu.memory_space<vmem>>, %arg4: memref<1x128xf32, #tpu.memory_space<vmem>>, %arg5: memref<1x288x128xbf16, #tpu.memory_space<vmem>>, %arg6: memref<288x36xbf16, #tpu.memory_space<vmem>>) attributes {dimension_semantics = [#tpu.dimension_semantics<parallel>, #tpu.dimension_semantics<parallel>], iteration_bounds = array<i64: 2, 1>, scalar_prefetch = 0 : i64, scratch_operands = 1 : i64, tpu.core_type = #tpu.core_type<tc>, window_params = [{transform_indices = @transform_0, window_bounds = array<i64: 1, 1, 342, 4>}, {pipeline_mode = #tpu.pipeline_mode<synchronous>, transform_indices = @transform_1, window_bounds = array<i64: 36, 128>}, {pipeline_mode = #tpu.pipeline_mode<synchronous>, transform_indices = @transform_2, window_bounds = array<i64: 1, 128>}, {transform_indices = @transform_3, window_bounds = array<i64: 1, 288, 128>}]} {
    %c0 = arith.constant 0 : index
    %c0_0 = arith.constant 0 : index
    %c0_1 = arith.constant 0 : index
    %c0_2 = arith.constant 0 : index
    %0 = vector.load %arg2[%c0, %c0_0, %c0_1, %c0_2] : memref<1x1x342x4xbf16, #tpu.memory_space<vmem>>, vector<1x1x288x4xbf16>
    %1 = vector.shape_cast %0 : vector<1x1x288x4xbf16> to vector<288x4xbf16>
    %c0_3 = arith.constant 0 : index
    %c0_4 = arith.constant 0 : index
    %2 = vector.load %arg6[%c0_3, %c0_4] : memref<288x36xbf16, #tpu.memory_space<vmem>>, vector<288x4xbf16>
    tpu.vector_store %arg6[%c0_3, %c0_4], %1 {strides = array<i32>} : memref<288x36xbf16, #tpu.memory_space<vmem>>, vector<288x4xbf16>,
    %c0_5 = arith.constant 0 : index
    %c0_6 = arith.constant 0 : index
    %c1 = arith.constant 1 : index
    %c0_7 = arith.constant 0 : index
    %3 = vector.load %arg2[%c0_5, %c0_6, %c1, %c0_7] : memref<1x1x342x4xbf16, #tpu.memory_space<vmem>>, vector<1x1x288x4xbf16>
    %4 = vector.shape_cast %3 : vector<1x1x288x4xbf16> to vector<288x4xbf16>
    %c0_8 = arith.constant 0 : index
    %c4 = arith.constant 4 : index
    %5 = vector.load %arg6[%c0_8, %c4] : memref<288x36xbf16, #tpu.memory_space<vmem>>, vector<288x4xbf16>
    tpu.vector_store %arg6[%c0_8, %c4], %4 {strides = array<i32>} : memref<288x36xbf16, #tpu.memory_space<vmem>>, vector<288x4xbf16>,
    %c0_9 = arith.constant 0 : index
    %c0_10 = arith.constant 0 : index
    %c2 = arith.constant 2 : index
    %c0_11 = arith.constant 0 : index
    %6 = vector.load %arg2[%c0_9, %c0_10, %c2, %c0_11] : memref<1x1x342x4xbf16, #tpu.memory_space<vmem>>, vector<1x1x288x4xbf16>
    %7 = vector.shape_cast %6 : vector<1x1x288x4xbf16> to vector<288x4xbf16>
    %c0_12 = arith.constant 0 : index
    %c8 = arith.constant 8 : index
    %8 = vector.load %arg6[%c0_12, %c8] : memref<288x36xbf16, #tpu.memory_space<vmem>>, vector<288x4xbf16>
    tpu.vector_store %arg6[%c0_12, %c8], %7 {strides = array<i32>} : memref<288x36xbf16, #tpu.memory_space<vmem>>, vector<288x4xbf16>,
    %c0_13 = arith.constant 0 : index
    %c0_14 = arith.constant 0 : index
    %c18 = arith.constant 18 : index
    %c0_15 = arith.constant 0 : index
    %9 = vector.load %arg2[%c0_13, %c0_14, %c18, %c0_15] : memref<1x1x342x4xbf16, #tpu.memory_space<vmem>>, vector<1x1x288x4xbf16>
    %10 = vector.shape_cast %9 : vector<1x1x288x4xbf16> to vector<288x4xbf16>
    %c0_16 = arith.constant 0 : index
    %c12 = arith.constant 12 : index
    %11 = vector.load %arg6[%c0_16, %c12] : memref<288x36xbf16, #tpu.memory_space<vmem>>, vector<288x4xbf16>
    tpu.vector_store %arg6[%c0_16, %c12], %10 {strides = array<i32>} : memref<288x36xbf16, #tpu.memory_space<vmem>>, vector<288x4xbf16>,
    %c0_17 = arith.constant 0 : index
    %c0_18 = arith.constant 0 : index
    %c19 = arith.constant 19 : index
    %c0_19 = arith.constant 0 : index
    %12 = vector.load %arg2[%c0_17, %c0_18, %c19, %c0_19] : memref<1x1x342x4xbf16, #tpu.memory_space<vmem>>, vector<1x1x288x4xbf16>
    %13 = vector.shape_cast %12 : vector<1x1x288x4xbf16> to vector<288x4xbf16>
    %c0_20 = arith.constant 0 : index
    %c16 = arith.constant 16 : index
    %14 = vector.load %arg6[%c0_20, %c16] : memref<288x36xbf16, #tpu.memory_space<vmem>>, vector<288x4xbf16>
    tpu.vector_store %arg6[%c0_20, %c16], %13 {strides = array<i32>} : memref<288x36xbf16, #tpu.memory_space<vmem>>, vector<288x4xbf16>,
    %c0_21 = arith.constant 0 : index
    %c0_22 = arith.constant 0 : index
    %c20 = arith.constant 20 : index
    %c0_23 = arith.constant 0 : index
    %15 = vector.load %arg2[%c0_21, %c0_22, %c20, %c0_23] : memref<1x1x342x4xbf16, #tpu.memory_space<vmem>>, vector<1x1x288x4xbf16>
    %16 = vector.shape_cast %15 : vector<1x1x288x4xbf16> to vector<288x4xbf16>
    %c0_24 = arith.constant 0 : index
    %c20_25 = arith.constant 20 : index
    %17 = vector.load %arg6[%c0_24, %c20_25] : memref<288x36xbf16, #tpu.memory_space<vmem>>, vector<288x4xbf16>
    tpu.vector_store %arg6[%c0_24, %c20_25], %16 {strides = array<i32>} : memref<288x36xbf16, #tpu.memory_space<vmem>>, vector<288x4xbf16>,
    %c0_26 = arith.constant 0 : index
    %c0_27 = arith.constant 0 : index
    %c36 = arith.constant 36 : index
    %c0_28 = arith.constant 0 : index
    %18 = vector.load %arg2[%c0_26, %c0_27, %c36, %c0_28] : memref<1x1x342x4xbf16, #tpu.memory_space<vmem>>, vector<1x1x288x4xbf16>
    %19 = vector.shape_cast %18 : vector<1x1x288x4xbf16> to vector<288x4xbf16>
    %c0_29 = arith.constant 0 : index
    %c24 = arith.constant 24 : index
    %20 = vector.load %arg6[%c0_29, %c24] : memref<288x36xbf16, #tpu.memory_space<vmem>>, vector<288x4xbf16>
    tpu.vector_store %arg6[%c0_29, %c24], %19 {strides = array<i32>} : memref<288x36xbf16, #tpu.memory_space<vmem>>, vector<288x4xbf16>,
    %c0_30 = arith.constant 0 : index
    %c0_31 = arith.constant 0 : index
    %c37 = arith.constant 37 : index
    %c0_32 = arith.constant 0 : index
    %21 = vector.load %arg2[%c0_30, %c0_31, %c37, %c0_32] : memref<1x1x342x4xbf16, #tpu.memory_space<vmem>>, vector<1x1x288x4xbf16>
    %22 = vector.shape_cast %21 : vector<1x1x288x4xbf16> to vector<288x4xbf16>
    %c0_33 = arith.constant 0 : index
    %c28 = arith.constant 28 : index
    %23 = vector.load %arg6[%c0_33, %c28] : memref<288x36xbf16, #tpu.memory_space<vmem>>, vector<288x4xbf16>
    tpu.vector_store %arg6[%c0_33, %c28], %22 {strides = array<i32>} : memref<288x36xbf16, #tpu.memory_space<vmem>>, vector<288x4xbf16>,
    %c0_34 = arith.constant 0 : index
    %c0_35 = arith.constant 0 : index
    %c38 = arith.constant 38 : index
    %c0_36 = arith.constant 0 : index
    %24 = vector.load %arg2[%c0_34, %c0_35, %c38, %c0_36] : memref<1x1x342x4xbf16, #tpu.memory_space<vmem>>, vector<1x1x288x4xbf16>
    %25 = vector.shape_cast %24 : vector<1x1x288x4xbf16> to vector<288x4xbf16>
    %c0_37 = arith.constant 0 : index
    %c32 = arith.constant 32 : index
    %26 = vector.load %arg6[%c0_37, %c32] : memref<288x36xbf16, #tpu.memory_space<vmem>>, vector<288x4xbf16>
    tpu.vector_store %arg6[%c0_37, %c32], %25 {strides = array<i32>} : memref<288x36xbf16, #tpu.memory_space<vmem>>, vector<288x4xbf16>,
    %c0_38 = arith.constant 0 : index
    %c0_39 = arith.constant 0 : index
    %27 = vector.load %arg6[%c0_38, %c0_39] : memref<288x36xbf16, #tpu.memory_space<vmem>>, vector<288x36xbf16>
    %c0_40 = arith.constant 0 : index
    %c0_41 = arith.constant 0 : index
    %28 = vector.load %arg3[%c0_40, %c0_41] : memref<36x128xbf16, #tpu.memory_space<vmem>>, vector<36x128xbf16>
    %cst = arith.constant dense<0.000000e+00> : vector<288x128xf32>
    %29 = tpu.matmul %27, %28, %cst {dimension_numbers = #tpu.dot_dimension_numbers<[1], [0], [0], [1], [0, 0, 1, 1], [], []>} : vector<288x36xbf16>, vector<36x128xbf16>, vector<288x128xf32> -> vector<288x128xf32>
    %c0_42 = arith.constant 0 : index
    %c0_43 = arith.constant 0 : index
    %30 = vector.load %arg4[%c0_42, %c0_43] : memref<1x128xf32, #tpu.memory_space<vmem>>, vector<1x128xf32>
    %31 = vector.broadcast %30 : vector<1x128xf32> to vector<288x128xf32>
    %32 = arith.addf %29, %31 : vector<288x128xf32>
    %cst_44 = arith.constant 0.000000e+00 : f32
    %33 = vector.broadcast %cst_44 : f32 to vector<288x128xf32>
    %34 = arith.maximumf %32, %33 : vector<288x128xf32>
    %35 = arith.truncf %34 : vector<288x128xf32> to vector<288x128xbf16>
    %c0_45 = arith.constant 0 : index
    %c0_46 = arith.constant 0 : index
    %c0_47 = arith.constant 0 : index
    %36 = vector.load %arg5[%c0_45, %c0_46, %c0_47] : memref<1x288x128xbf16, #tpu.memory_space<vmem>>, vector<1x288x128xbf16>
    %37 = vector.shape_cast %36 : vector<1x288x128xbf16> to vector<288x128xbf16>
    %38 = vector.shape_cast %35 : vector<288x128xbf16> to vector<1x288x128xbf16>
    tpu.vector_store %arg5[%c0_45, %c0_46, %c0_47], %38 {strides = array<i32>} : memref<1x288x128xbf16, #tpu.memory_space<vmem>>, vector<1x288x128xbf16>,
    return
  }
  func.func @transform_0(%arg0: i32, %arg1: i32) -> (i32, i32, i32, i32) {
    %c0_i32 = arith.constant 0 : i32
    %c0_i32_0 = arith.constant 0 : i32
    %c0_i32_1 = arith.constant 0 : i32
    return %arg0, %arg1, %c0_i32, %c0_i32_0 : i32, i32, i32, i32
  }
  func.func @transform_1(%arg0: i32, %arg1: i32) -> (i32, i32) {
    %c0_i32 = arith.constant 0 : i32
    %c0_i32_0 = arith.constant 0 : i32
    %c0_i32_1 = arith.constant 0 : i32
    return %c0_i32, %c0_i32_0 : i32, i32
  }
  func.func @transform_2(%arg0: i32, %arg1: i32) -> (i32, i32) {
    %c0_i32 = arith.constant 0 : i32
    %c0_i32_0 = arith.constant 0 : i32
    %c0_i32_1 = arith.constant 0 : i32
    return %c0_i32, %c0_i32_0 : i32, i32
  }
  func.func @transform_3(%arg0: i32, %arg1: i32) -> (i32, i32, i32) {
    %c0_i32 = arith.constant 0 : i32
    %c0_i32_0 = arith.constant 0 : i32
    return %arg0, %arg1, %c0_i32 : i32, i32, i32
  }
}

</mosaic_0001>

<bundles_post_ra>
// kernel: basic_conv_forward.1
= control target key start
LH: loop header
LB: loop body
LE: loop exit
PB: predicated region body
PF: predicated region fallthrough
CT: control target
= control target key end

     0   :  { %s3972_s12 = smov 0   ;;  %s3974_s13 = smov 0   ;;  %s5169_s0 = inlined_call_operand.vmem [shape: bf16[2,1,342,4], index: 0, kind: input, shape index: {}]   ;;  %s5170_s1 = inlined_call_operand.vmem [shape: bf16[36,128], index: 1, kind: input, shape index: {}]   ;;  %s5171_s2 = inlined_call_operand.vmem [shape: f32[1,128], index: 2, kind: input, shape index: {}]   ;;  %s5172_s3 = inlined_call_operand.vmem [shape: bf16[2,288,128], index: 3, kind: output, shape index: {}]  }
   0x1   :  { %s3976_s14 = smov 0  }
   0x2 LB: > { %s25_s15 = sadd.s32 1, %s3938_s13  ;;  %p3266_p0 = scmp.ge.s32.totalorder %s3942_s14, 1  ;;  %s3942_s14 = sphi %s3976_s14, %s13_s14   ;;  %s3938_s13 = sphi %s3974_s13, %s5176_s13   ;;  %s3934_s12 = sphi %s3972_s12, %s5175_s12  }
   0x3   : > { %p27_p1 = scmp.ge.s32.totalorder %s25_s15, 2  ;;  %p157_p2 = scmp.lt.s32.totalorder %s3942_s14, 3 }
   0x5   : > { %s5178_s15 = smov (%p27_p1, %s25_s15), 0  ;;  %p158_p3 = pnand %p3266_p0, %p157_p2 }
   0x6   : > { %p189_p4 = scmp.lt.s32.totalorder (!%p158_p3), %s3934_s12, 1  ;;  %vm854_vm0 = vcmask (!%p158_p3), 1046528   ;;  %vm1709_vm1 = vcmask (!%p158_p3), 1045504   ;;  %s3944_s20 = smov (!%p158_p3), 12   ;;  %vm502_vm2 = vsmask.f32 (!%p158_p3), 7424 }
   0x7   : > { %161 = sbr.rel (%p158_p3) target bundleno = 652 (0x28c), region = 32  ;;  %s3945_s21 = smov (!%p158_p3), 8   ;;  %vm1335_vm3 = vsmask.f32 (!%p158_p3), 6400  ;;  %vm2190_vm4 = vsmask.f32 (!%p158_p3), 5376 }
   0x8   : > { %s3946_s22 = smov (!%p158_p3), 20   ;;  %s3947_s23 = smov (!%p158_p3), 4   ;;  %vm2564_vm5 = vcmask (!%p158_p3), 1044480   ;;  %vm353_vm6 = vcmask (!%p158_p3), 31744   ;;  %vm2775_vm7 = vcmask (!%p158_p3), 1041408   ;;  %vm705_vm8 = vcmask (!%p158_p3), 64544  }
   0x9   : > { %s3948_s24 = smov (!%p158_p3), 16   ;;  %s3949_s25 = smov (!%p158_p3), 24   ;;  %vm946_vm9 = vcmask (!%p158_p3), 97344   ;;  %vm1186_vm10 = vcmask (!%p158_p3), 130144   ;;  %vm1560_vm11 = vcmask (!%p158_p3), 162944   ;;  %vm1801_vm12 = vcmask (!%p158_p3), 195744  }
   0xa   : > { %s3950_s26 = smov (!%p158_p3), 28   ;;  %s3951_s27 = smov (!%p158_p3), 32   ;;  %vm2041_vm13 = vcmask (!%p158_p3), 228544   ;;  %vm2415_vm14 = vcmask (!%p158_p3), 261344   ;;  %vm2656_vm15 = vcmask (!%p158_p3), 294144  }
   0xe   : > { %s5180_s12 = smov (!%p189_p4, %s3934_s12), 1 }
   0xf   : > { %s3713_s16 = smul.u32 172, %s5180_s12 }
  0x10   : > { %s3714_s9 = smul.u32 144, %s5180_s12 }
  0x11   : > { %s3996_s19 = scalar_lea.vmem %s5169_s0, %s3713_s16 }
  0x12   : > { %v3747_v0 = vld [vmem:[%s3996_s19 + $0x8] sm:$0xfe]   ;;  %v3748_v1 = vld [vmem:[%s3996_s19 + $0x10] sm:$0xff]   ;;  %v3749_v4 = vld [vmem:[%s3996_s19] sm:$0xfe]   ;;  %s5089_s16 = scalar_lea.vmem %s5172_s3, %s3714_s9 }
  0x13   : > { %v1095_v2 = vrot.slane %v3747_v0, 1  ;;  %v1096_v3 = vrot.slane %v3748_v1, 1  ;;  %v3750_v5 = vld [vmem:[%s3996_s19 + $0x8] sm:$0xff]   ;;  %v855_v7 = vrot.slane %v3749_v4, 1  ;;  %v3752_v8 = vld [vmem:[%s3996_s19 + $0x10] sm:$0xff]   ;;  %v4010_v13 = vld [vmem:[%s3996_s19 + $0x18] sm:$0xff]  }
  0x14   : > { %v856_v9 = vrot.slane %v3750_v5, 1  ;;  %v3751_v10 = vld [vmem:[%s3996_s19 + $0x8] sm:$0xfc]   ;;  %v4007_v11 = vld [vmem:[%s3996_s19 + $0x10] sm:$0xff]   ;;  %v1711_v12 = vrot.slane %v3752_v8, 2  ;;  %v3755_v17 = vld [vmem:[%s3996_s19] sm:$0xff]  }
  0x15   : > { %v1097_v6 = vsel %vm854_vm0, %v1095_v2, %v1096_v3  ;;  %v1710_v15 = vrot.slane %v3751_v10, 2  ;;  %v858_v16 = vrot.slane %v4007_v11, 1  ;;  %v1098_v20 = vrot.slane %v4010_v13, 1  ;;  %v3756_v21 = vld [vmem:[%s3996_s19 + $0x8] sm:$0xff]   ;;  %v4024_v24 = vld [vmem:[%s3996_s19 + $0x18] sm:$0xff]   ;;  %v4027_v25 = vld [vmem:[%s3996_s19 + $0x10] sm:$0xff]  }
  0x16   : > { %1132 = vrot.lane.b32.xlu0 %v1097_v6, %s3944_s20  ;;  %v857_v14 = vsel %vm854_vm0, %v855_v7, %v856_v9  ;;  %v504_v22 = vshrl.u32 %v3755_v17, 16  ;;  %v506_v23 = vshll.u32 %v3755_v17, 16  ;;  %v511_v26 = vshll.u32 %v3756_v21, 16  ;;  %v3759_v31 = vld [vmem:[%s3996_s19 + $0x10] sm:$0xff]   ;;  %v3760_v34 = vld [vmem:[%s3996_s19 + $0x18] sm:$0xff]   ;;  %v4044_v46 = vld [vmem:[%s3996_s19 + $0x20] sm:$0xff]  }
  0x17   : > { %892 = vrot.lane.b32.xlu1 %v857_v14, %s3945_s21  ;;  %v1712_v18 = vsel %vm1709_vm1, %v1710_v15, %v1711_v12  ;;  %v859_v19 = vsel %vm854_vm0, %v856_v9, %v858_v16  ;;  %v515_v27 = vshrl.u32 %v3756_v21, 16  ;;  %v1713_v29 = vrot.slane %v4024_v24, 2  ;;  %v3762_v42 = vld [vmem:[%s3996_s19 + $0x18] sm:$0xff]   ;;  %v3761_v45 = vld [vmem:[%s3996_s19 + $0x8] sm:$0xfe]   ;;  %v3766_v1 = vld [vmem:[%s3996_s19 + $0x20] sm:$0xff]  }
  0x18   : > { %v508_v28 = vrot.slane %v506_v23, 1  ;;  %v519_v30 = vshll.u32 %v4027_v25, 16  ;;  %v1099_v32 = vsel %vm854_vm0, %v1096_v3, %v1098_v20  ;;  %v513_v33 = vrot.slane %v511_v26, 1  ;;  %v3765_v51 = vld [vmem:[%s3996_s19 + $0x18] sm:$0xff]   ;;  %v3764_v61 = vld [vmem:[%s3996_s19 + $0x10] sm:$0xfc]  }
  0x19   : > { %v1345_v37 = vshrl.u32 %v3759_v31, 16  ;;  %v1348_v39 = vshll.u32 %v3759_v31, 16  ;;  %v1354_v40 = vshrl.u32 %v3760_v34, 16  ;;  %v1357_v41 = vshll.u32 %v3760_v34, 16  ;;  %v3767_v4 = vld [vmem:[%s3996_s19 + $0x10] sm:$0xfc]  }
  0x1a   : > { %1747 = vrot.lane.b32.xlu0 %v1712_v18, %s3946_s22  ;;  %v509_v35 = vor.u32 %v508_v28, %v504_v22  ;;  %v4037_v36 = vrot.slane %v519_v30, 1  ;;  %v517_v38 = vor.u32 %v515_v27, %v513_v33  ;;  %v1714_v47 = vsel %vm1709_vm1, %v1711_v12, %v1713_v29  ;;  %v3768_v9 = vld [vmem:[%s3996_s19 + $0x18] sm:$0xff]   ;;  %v3769_v31 = vld [vmem:[%s3996_s19 + $0x10] sm:$0xf8]  }
  0x1b   : > { %894 = vrot.lane.b32.xlu1 %v859_v19, %s3945_s21  ;;  %v1347_v44 = vrot.slane %v1345_v37, 1  ;;  %v1350_v48 = vrot.slane %v1348_v39, 2  ;;  %v1356_v49 = vrot.slane %v1354_v40, 1  ;;  %v1359_v50 = vrot.slane %v1357_v41, 2  ;;  %v3770_v10 = vld [vmem:[%s3996_s19 + $0x18] sm:$0xff]   ;;  %v3772_v39 = vld [vmem:[%s3996_s19 + $0x50] sm:$0xff]  }
  0x1c   : > { %v514_v43 = vsel %vm502_vm2, %v509_v35, %v513_v33  ;;  %v522_v52 = vsel %vm502_vm2, %v517_v38, %v4037_v36  ;;  %v1337_v53 = vshrl.u32 %v3761_v45, 16  ;;  %v1340_v54 = vshll.u32 %v3761_v45, 16  ;;  %v4080_v35 = vld [vmem:[%s3996_s19 + $0x20] sm:$0xff]  }
  0x1d   : > { %v1351_v55 = vor.u32 %v1350_v48, %v1347_v44  ;;  %v4053_v56 = vor.u32 %v1359_v50, %v1356_v49  ;;  %v1951_v57 = vrot.slane %v3762_v42, 2  ;;  %v1953_v58 = vrot.slane %v4044_v46, 2 }
  0x1e   : > { %651 = vrot.lane.b32.xlu0 %v514_v43, %s3947_s23  ;;  %v1339_v59 = vrot.slane %v1337_v53, 1  ;;  %v1342_v60 = vrot.slane %v1340_v54, 2  ;;  %v1950_v0 = vrot.slane %v3764_v61, 2  ;;  %v2200_v2 = vshrl.u32 %v3765_v51, 16  ;;  %v3773_v43 = vld [vmem:[%s3996_s19 + $0x58] sm:$0xff]  }
  0x1f   : > { %1134 = vrot.lane.b32.xlu1 %v1099_v32, %s3944_s20  ;;  %v1361_v62 = vsel %vm1335_vm3, %v1351_v55, %v4053_v56  ;;  %v2203_v3 = vshll.u32 %v3765_v51, 16  ;;  %v1954_v6 = vsel %vm1709_vm1, %v1951_v57, %v1953_v58  ;;  %v2209_v12 = vshrl.u32 %v3766_v1, 16 }
  0x20   : > { %v1343_v63 = vor.u32 %v1342_v60, %v1339_v59  ;;  %v2202_v7 = vrot.slane %v2200_v2, 2  ;;  %v2212_v14 = vshll.u32 %v3766_v1, 16  ;;  %v2192_v15 = vshrl.u32 %v3767_v4, 16  ;;  %v4105_v59 = vld [vmem:[%s3996_s19 + $0x50] sm:$0xff]  }
  0x21   : > { %v2205_v8 = vrot.slane %v2203_v3, 3  ;;  %v2195_v17 = vshll.u32 %v3767_v4, 16  ;;  %v1952_v18 = vsel %vm1709_vm1, %v1950_v0, %v1951_v57  ;;  %v523_v21 = vshrl.u32 %v4027_v25, 16  ;;  %v3778_v3 = vld [vmem:[%s3996_s19 + $0x18] sm:$0xff]   ;;  %v4119_v4 = vld [vmem:[%s3996_s19 + $0x60] sm:$0xff]  }
  0x22   : > { %653 = vrot.lane.b32.xlu0 %v522_v52, %s3947_s23  ;;  %v1352_v5 = vsel %vm1335_vm3, %v1343_v63, %v1351_v55  ;;  %v527_v22 = vshll.u32 %v3768_v9, 16  ;;  %v2211_v23 = vrot.slane %v2209_v12, 2  ;;  %v2214_v26 = vrot.slane %v2212_v14, 3  ;;  %v3777_v63 = vld [vmem:[%s3996_s19 + $0x58] sm:$0xff]   ;;  %v3782_v14 = vld [vmem:[%s3996_s19 + $0x60] sm:$0xff]  }
  0x23   : > { %1749 = vrot.lane.b32.xlu1 %v1714_v47, %s3946_s22  ;;  %v2206_v19 = vor.u32 %v2205_v8, %v2202_v7  ;;  %v2194_v27 = vrot.slane %v2192_v15, 2  ;;  %v2197_v28 = vrot.slane %v2195_v17, 3  ;;  %v2566_v32 = vrot.slane %v3770_v10, 3  ;;  %v4093_v47 = vld [vmem:[%s3996_s19 + $0x20] sm:$0xff]  }
  0x24   : > { %v529_v30 = vrot.slane %v527_v22, 1  ;;  %v4076_v33 = vor.u32 %v2214_v26, %v2211_v23  ;;  %v525_v34 = vor.u32 %v523_v21, %v4037_v36  ;;  %v531_v37 = vshrl.u32 %v3768_v9, 16  ;;  %v4090_v36 = vld [vmem:[%s3996_s19 + $0x60] sm:$0xff]   ;;  %v4130_v9 = vld [vmem:[%s3996_s19 + $0x58] sm:$0xff]  }
  0x25   : > { %v2198_v25 = vor.u32 %v2197_v28, %v2194_v27  ;;  %v2565_v38 = vrot.slane %v3769_v31, 3  ;;  %v2568_v42 = vrot.slane %v4080_v35, 3  ;;  %v583_v44 = vshll.u32 %v3772_v39, 16  ;;  %v3787_v23 = vld [vmem:[%s3996_s19 + $0x60] sm:$0xff]   ;;  %v4150_v28 = vld [vmem:[%s3996_s19 + $0x68] sm:$0xff]  }
  0x26   : > { %1506 = vrot.lane.b32.xlu0 %v1352_v5, %s3948_s24  ;;  %v2216_v40 = vsel %vm2190_vm4, %v2206_v19, %v4076_v33  ;;  %v587_v45 = vshrl.u32 %v3772_v39, 16  ;;  %v530_v48 = vsel %vm502_vm2, %v525_v34, %v529_v30  ;;  %v591_v49 = vshll.u32 %v3773_v43, 16 }
  0x27   : > { %1508 = vrot.lane.b32.xlu1 %v1361_v62, %s3948_s24  ;;  %v2207_v41 = vsel %vm2190_vm4, %v2198_v25, %v2206_v19  ;;  %v595_v50 = vshrl.u32 %v3773_v43, 16  ;;  %v2567_v51 = vsel %vm2564_vm5, %v2565_v38, %v2566_v32  ;;  %v4098_v52 = vrot.slane %v583_v44, 1  ;;  %v3786_v19 = vld [vmem:[%s3996_s19 + $0x58] sm:$0xff]   ;;  %v3790_v43 = vld [vmem:[%s3996_s19 + $0x28] sm:$0xff]  }
  0x28   : > { %v599_v53 = vshll.u32 %v4090_v36, 16  ;;  %v535_v54 = vshll.u32 %v4093_v47, 16  ;;  %v593_v55 = vrot.slane %v591_v49, 1  ;;  %v2569_v60 = vsel %vm2564_vm5, %v2566_v32, %v2568_v42 }
  0x29   : > { %v589_v57 = vor.u32 %v587_v45, %v4098_v52  ;;  %v533_v1 = vor.u32 %v531_v37, %v529_v30  ;;  %v874_v5 = vrot.slane %v4105_v59, 1  ;;  %v876_v8 = vrot.slane %v3777_v63, 1  ;;  %v4153_v30 = vld [vmem:[%s3996_s19 + $0x28] sm:$0xff]   ;;  %v3788_v37 = vld [vmem:[%s3996_s19 + $0x20] sm:$0xff]  }
  0x2a   : > { %1987 = vrot.lane.b32.xlu0 %v1952_v18, %s3949_s25  ;;  %v597_v61 = vor.u32 %v595_v50, %v593_v55  ;;  %v4111_v62 = vrot.slane %v599_v53, 1  ;;  %v4115_v2 = vrot.slane %v535_v54, 1  ;;  %v860_v12 = vrot.slane %v3778_v3, 1  ;;  %v3783_v18 = vld [vmem:[%s3996_s19 + $0x20] sm:$0xff]  }
  0x2b   : > { %1989 = vrot.lane.b32.xlu1 %v1954_v6, %s3949_s25  ;;  %v594_v0 = vsel %vm502_vm2, %v589_v57, %v593_v55  ;;  %v4124_v6 = vld [vmem:[%s3996_s19 + $0x20] sm:$0xff]   ;;  %v878_v15 = vrot.slane %v4119_v4, 1  ;;  %v877_v21 = vsel %vm854_vm0, %v874_v5, %v876_v8  ;;  %v1114_v22 = vrot.slane %v4130_v9, 1  ;;  %v3826_v4 = vld [vmem:[%s3996_s19 + $0x78] sm:$0xff]  }
  0x2c   : > { %v602_v7 = vsel %vm502_vm2, %v597_v61, %v4111_v62  ;;  %v538_v10 = vsel %vm502_vm2, %v533_v1, %v4115_v2  ;;  %v862_v17 = vrot.slane %v4124_v6, 1  ;;  %v861_v26 = vsel %vm854_vm0, %v858_v16, %v860_v12  ;;  %v3789_v16 = vld [vmem:[%s3996_s19 + $0x68] sm:$0xff]  }
  0x2d   : > { %v1116_v27 = vrot.slane %v3782_v14, 1  ;;  %v1426_v31 = vshrl.u32 %v3786_v19, 16  ;;  %v1429_v32 = vshll.u32 %v3786_v19, 16  ;;  %v1435_v25 = vshrl.u32 %v3787_v23, 16  ;;  %v3792_v19 = vld [vmem:[%s3996_s19 + $0x60] sm:$0xff]  }
  0x2e   : > { %2361 = vrot.lane.b32.xlu0 %v2207_v41, %s3950_s26  ;;  %v1438_v34 = vshll.u32 %v3787_v23, 16  ;;  %v879_v11 = vsel %vm854_vm0, %v876_v8, %v878_v15  ;;  %v863_v38 = vsel %vm854_vm0, %v860_v12, %v862_v17  ;;  %v1100_v39 = vrot.slane %v3783_v18, 1  ;;  %v4187_v18 = vld [vmem:[%s3996_s19 + $0x58] sm:$0xff]  }
  0x2f   : > { %2363 = vrot.lane.b32.xlu1 %v2216_v40, %s3950_s26  ;;  %v1363_v40 = vshrl.u32 %v3788_v37, 16  ;;  %v1366_v41 = vshll.u32 %v3788_v37, 16  ;;  %v1117_v44 = vsel %vm854_vm0, %v1114_v22, %v1116_v27  ;;  %v1118_v45 = vrot.slane %v4150_v28, 1 }
  0x30   : > { %v1428_v49 = vrot.slane %v1426_v31, 1  ;;  %v1431_v50 = vrot.slane %v1429_v32, 2  ;;  %v1440_v53 = vrot.slane %v1438_v34, 2  ;;  %v1444_v57 = vshrl.u32 %v3789_v16, 16  ;;  %v4202_v32 = vld [vmem:[%s3996_s19 + $0x68] sm:$0xff]  }
  0x31   : > { %v1365_v54 = vrot.slane %v1363_v40, 1  ;;  %v1368_v55 = vrot.slane %v1366_v41, 2  ;;  %v1101_v61 = vsel %vm854_vm0, %v1098_v20, %v1100_v39  ;;  %v1372_v63 = vshrl.u32 %v3790_v43, 16  ;;  %v4207_v34 = vld [vmem:[%s3996_s19 + $0x28] sm:$0xff]   ;;  %v3801_v41 = vld [vmem:[%s3996_s19 + $0x60] sm:$0xff]  }
  0x32   : > { %2602 = vrot.lane.b32.xlu0 %v2567_v51, %s3951_s27  ;;  %v1437_v51 = vrot.slane %v1435_v25, 1  ;;  %v1119_v1 = vsel %vm854_vm0, %v1116_v27, %v1118_v45  ;;  %v4181_v3 = vor.u32 %v1431_v50, %v1428_v49  ;;  %v1446_v8 = vrot.slane %v1444_v57, 1  ;;  %v3798_v40 = vld [vmem:[%s3996_s19 + $0x28] sm:$0xff]  }
  0x33   : > { %655 = vrot.lane.b32.xlu1 %v530_v48, %s3947_s23  ;;  %v1102_v48 = vrot.slane %v4153_v30, 1  ;;  %v1374_v12 = vrot.slane %v1372_v63, 1  ;;  %v1729_v25 = vrot.slane %v4187_v18, 2  ;;  %v3802_v49 = vld [vmem:[%s3996_s19 + $0x68] sm:$0xff]   ;;  %v2281_v63 = vshrl.u32 %v3801_v41, 16 }
  0x35   : > { %v1103_v20 = vsel %vm854_vm0, %v1100_v39, %v1102_v48 }
  0x36   : > { %671 = vrot.lane.b32.xlu0 %v594_v0, %s3947_s23  ;;  %v1375_v0 = vshll.u32 %v3790_v43, 16  ;;  %v4222_v43 = vld [vmem:[%s3996_s19 + $0x70] sm:$0xff]  }
  0x37   : > { %2604 = vrot.lane.b32.xlu1 %v2569_v60, %s3951_s27  ;;  %v1447_v60 = vshll.u32 %v3789_v16, 16  ;;  %v4213_v16 = vld [vmem:[%s3996_s19 + $0x60] sm:$0xff]  }
  0x38   : > { %v1377_v14 = vrot.slane %v1375_v0, 2  ;;  %v1969_v57 = vrot.slane %v4213_v16, 2  ;;  %v2284_v0 = vshll.u32 %v3801_v41, 16 }
  0x39   : > { %v1449_v13 = vrot.slane %v1447_v60, 2 }
  0x3a   : > { %657 = vrot.lane.b32.xlu0 %v538_v10, %s3947_s23  ;;  %v1369_v10 = vor.u32 %v1368_v55, %v1365_v54  ;;  %v4199_v31 = vor.u32 %v1377_v14, %v1374_v12  ;;  %v3803_v54 = vld [vmem:[%s3996_s19 + $0x28] sm:$0xff]   ;;  %v1717_v55 = vrot.slane %v4207_v34, 2  ;;  %v3805_v14 = vld [vmem:[%s3996_s19 + $0x30] sm:$0xff]  }
  0x3b   : > { %673 = vrot.lane.b32.xlu1 %v602_v7, %s3947_s23  ;;  %v1441_v7 = vor.u32 %v1440_v53, %v1437_v51  ;;  %v4194_v23 = vor.u32 %v1449_v13, %v1446_v8  ;;  %v1733_v53 = vrot.slane %v4202_v32, 2  ;;  %v2293_v13 = vshll.u32 %v3802_v49, 16  ;;  %v4480_v32 = vld [vmem:[%s3996_s19 + $0x40] sm:$0xff]  }
  0x3c   : > { %v1370_v27 = vsel %vm1335_vm3, %v4053_v56, %v1369_v10  ;;  %v1731_v56 = vrot.slane %v3792_v19, 2  ;;  %v1379_v39 = vsel %vm1335_vm3, %v1369_v10, %v4199_v31  ;;  %v2221_v12 = vshll.u32 %v3803_v54, 16 }
  0x3d   : > { %v1451_v37 = vsel %vm1335_vm3, %v1441_v7, %v4194_v23  ;;  %v2283_v19 = vrot.slane %v2281_v63, 2  ;;  %v2227_v41 = vshrl.u32 %v3805_v14, 16 }
  0x3e   : > { %896 = vrot.lane.b32.xlu0 %v861_v26, %s3945_s21  ;;  %v3793_v26 = vld [vmem:[%s3996_s19 + $0x20] sm:$0xff]   ;;  %v1732_v50 = vsel %vm1709_vm1, %v1729_v25, %v1731_v56  ;;  %v1734_v8 = vsel %vm1709_vm1, %v1731_v56, %v1733_v53 }
  0x3f   : > { %912 = vrot.lane.b32.xlu1 %v877_v21, %s3945_s21  ;;  %v1442_v21 = vsel %vm1335_vm3, %v4181_v3, %v1441_v7  ;;  %v2290_v7 = vshrl.u32 %v3802_v49, 16  ;;  %v2230_v49 = vshll.u32 %v3805_v14, 16 }
  0x42   : > { %898 = vrot.lane.b32.xlu0 %v863_v38, %s3945_s21  ;;  %v3797_v38 = vld [vmem:[%s3996_s19 + $0x68] sm:$0xff]  }
  0x43   : > { %914 = vrot.lane.b32.xlu1 %v879_v11, %s3945_s21  ;;  %v1715_v11 = vrot.slane %v3793_v26, 2  ;;  %v1971_v60 = vrot.slane %v3797_v38, 2  ;;  %v2292_v38 = vrot.slane %v2290_v7, 2  ;;  %v2229_v7 = vrot.slane %v2227_v41, 2 }
  0x45   : > { %v1716_v51 = vsel %vm1709_vm1, %v1713_v29, %v1715_v11  ;;  %v3804_v29 = vld [vmem:[%s3996_s19 + $0x70] sm:$0xff]   ;;  %v1718_v10 = vsel %vm1709_vm1, %v1715_v11, %v1717_v55  ;;  %v2295_v11 = vrot.slane %v2293_v13, 3  ;;  %v3807_v13 = vld [vmem:[%s3996_s19 + $0x68] sm:$0xff]  }
  0x46   : > { %1136 = vrot.lane.b32.xlu0 %v1101_v61, %s3944_s20  ;;  %v1955_v61 = vrot.slane %v3798_v40, 2  ;;  %v2299_v26 = vshrl.u32 %v3804_v29, 16  ;;  %v2223_v40 = vrot.slane %v2221_v12, 3  ;;  %v3809_v12 = vld [vmem:[%s3996_s19 + $0x68] sm:$0xff]  }
  0x47   : > { %1152 = vrot.lane.b32.xlu1 %v1117_v44, %s3944_s20  ;;  %v4225_v44 = vld [vmem:[%s3996_s19 + $0x30] sm:$0xff]   ;;  %v611_v35 = vshrl.u32 %v3809_v12, 16 }
  0x48   : > { %v1957_v24 = vrot.slane %v4225_v44, 2  ;;  %v1956_v56 = vsel %vm1709_vm1, %v1953_v58, %v1955_v61 }
  0x4a   : > { %1138 = vrot.lane.b32.xlu0 %v1103_v20, %s3944_s20  ;;  %v2218_v20 = vshrl.u32 %v3803_v54, 16  ;;  %v2296_v54 = vor.u32 %v2295_v11, %v2292_v38  ;;  %v1958_v63 = vsel %vm1709_vm1, %v1955_v61, %v1957_v24 }
  0x4b   : > { %1154 = vrot.lane.b32.xlu1 %v1119_v1, %s3944_s20  ;;  %v1973_v1 = vrot.slane %v4222_v43, 2 }
  0x4d   : > { %v1974_v46 = vsel %vm1709_vm1, %v1971_v60, %v1973_v1 }
  0x4e   : > { %1510 = vrot.lane.b32.xlu0 %v1370_v27, %s3948_s24  ;;  %v2302_v27 = vshll.u32 %v3804_v29, 16  ;;  %v2232_v29 = vrot.slane %v2230_v49, 3 }
  0x4f   : > { %1526 = vrot.lane.b32.xlu1 %v1442_v21, %s3948_s24  ;;  %v2286_v21 = vrot.slane %v2284_v0, 3 }
  0x50   : > { %v4283_v14 = vor.u32 %v2232_v29, %v2229_v7  ;;  %v3828_v7 = vld [vmem:[%s3996_s19 + $0x8] sm:$0xff]  }
  0x51   : > { %v4264_v58 = vor.u32 %v2286_v21, %v2283_v19  ;;  %v3810_v19 = vld [vmem:[%s3996_s19 + $0x28] sm:$0xff]   ;;  %v603_v21 = vshrl.u32 %v4090_v36, 16  ;;  %v539_v36 = vshrl.u32 %v4093_v47, 16  ;;  %355 = vst.msk [vmem:[#allocation2 + $0x8] sm:$0xff] %vm353_vm6, %v3828_v7  ;;  %v4364_v7 = vld [vmem:[%s3996_s19 + $0x78] sm:$0xff]  }
  0x52   : > { %1512 = vrot.lane.b32.xlu0 %v1379_v39, %s3948_s24  ;;  %v2220_v39 = vrot.slane %v2218_v20, 2  ;;  %v3808_v20 = vld [vmem:[%s3996_s19 + $0x28] sm:$0xff]   ;;  %v543_v11 = vshll.u32 %v3810_v19, 16 }
  0x53   : > { %1528 = vrot.lane.b32.xlu1 %v1451_v37, %s3948_s24  ;;  %v1972_v37 = vsel %vm1709_vm1, %v1969_v57, %v1971_v60  ;;  %v2297_v60 = vsel %vm2190_vm4, %v4264_v58, %v2296_v54  ;;  %v605_v49 = vor.u32 %v603_v21, %v4111_v62 }
  0x54   : > { %v2224_v0 = vor.u32 %v2223_v40, %v2220_v39  ;;  %v3825_v39 = vld [vmem:[%s3996_s19] sm:$0xff]   ;;  %v4298_v40 = vld [vmem:[%s3996_s19 + $0x70] sm:$0xff]  }
  0x55   : > { %354 = vst.msk [vmem:[#allocation2] sm:$0xff] %vm353_vm6, %v3825_v39  ;;  %v2588_v62 = vrot.slane %v4298_v40, 3  ;;  %v3823_v39 = vld [vmem:[%s3996_s19 + $0x70] sm:$0xff]   ;;  %v4590_v40 = vld [vmem:[%s3996_s19 + $0x40] sm:$0xff]  }
  0x56   : > { %1751 = vrot.lane.b32.xlu0 %v1716_v51, %s3946_s22  ;;  %v2304_v51 = vrot.slane %v2302_v27, 3  ;;  %v2225_v61 = vsel %vm2190_vm4, %v4076_v33, %v2224_v0  ;;  %v2586_v27 = vrot.slane %v3807_v13, 3  ;;  %v2570_v33 = vrot.slane %v3808_v20, 3 }
  0x57   : > { %1767 = vrot.lane.b32.xlu1 %v1732_v50, %s3946_s22  ;;  %v2301_v50 = vrot.slane %v2299_v26, 2  ;;  %v2234_v38 = vsel %vm2190_vm4, %v2224_v0, %v4283_v14  ;;  %v4317_v0 = vld [vmem:[%s3996_s19 + $0x30] sm:$0xff]   ;;  %v547_v20 = vshrl.u32 %v3810_v19, 16 }
  0x58   : > { %v2571_v47 = vsel %vm2564_vm5, %v2568_v42, %v2570_v33 }
  0x5a   : > { %1753 = vrot.lane.b32.xlu0 %v1718_v10, %s3946_s22  ;;  %v4278_v10 = vor.u32 %v2304_v51, %v2301_v50  ;;  %v4306_v51 = vld [vmem:[%s3996_s19 + $0x30] sm:$0xff]  }
  0x5b   : > { %1769 = vrot.lane.b32.xlu1 %v1734_v8, %s3946_s22  ;;  %v4270_v8 = vld [vmem:[%s3996_s19 + $0x60] sm:$0xff]   ;;  %v2572_v13 = vrot.slane %v4306_v51, 3 }
  0x5c   : > { %v5173_v26 = vrot.slane %v4270_v8, 3 }
  0x5d   : > { %v2573_v19 = vsel %vm2564_vm5, %v2570_v33, %v2572_v13 }
  0x5e   : > { %1991 = vrot.lane.b32.xlu0 %v1956_v56, %s3949_s25  ;;  %v607_v56 = vshll.u32 %v3809_v12, 16  ;;  %v2587_v41 = vsel %vm2564_vm5, %v5173_v26, %v2586_v27  ;;  %v2589_v12 = vsel %vm2564_vm5, %v2586_v27, %v2588_v62  ;;  %v4348_v27 = vld [vmem:[%s3996_s19 + $0x30] sm:$0xff]   ;;  %v1462_v26 = vshrl.u32 %v3826_v4, 16 }
  0x5f   : > { %2007 = vrot.lane.b32.xlu1 %v1972_v37, %s3949_s25  ;;  %v2306_v37 = vsel %vm2190_vm4, %v2296_v54, %v4278_v10  ;;  %v541_v54 = vor.u32 %v539_v36, %v4115_v2  ;;  %v3816_v36 = vld [vmem:[%s3996_s19 + $0x28] sm:$0xff]  }
  0x60   : > { %v609_v50 = vrot.slane %v607_v56, 1 }
  0x62   : > { %1993 = vrot.lane.b32.xlu0 %v1958_v63, %s3949_s25  ;;  %v545_v63 = vrot.slane %v543_v11, 1  ;;  %v610_v29 = vsel %vm502_vm2, %v605_v49, %v609_v50  ;;  %v4344_v11 = vld [vmem:[%s3996_s19 + $0x70] sm:$0xff]  }
  0x63   : > { %2009 = vrot.lane.b32.xlu1 %v1974_v46, %s3949_s25  ;;  %v4309_v46 = vld [vmem:[%s3996_s19 + $0x70] sm:$0xff]  }
  0x64   : > { %v615_v42 = vshll.u32 %v4309_v46, 16  ;;  %v546_v2 = vsel %vm502_vm2, %v541_v54, %v545_v63  ;;  %v549_v56 = vor.u32 %v547_v20, %v545_v63  ;;  %v3837_v49 = vld [vmem:[%s3996_s19 + $0x10] sm:$0xff]   ;;  %v882_v20 = vrot.slane %v4344_v11, 1  ;;  %v4654_v11 = vld [vmem:[%s3996_s19 + $0x88] sm:$0xff]  }
  0x65   : > { %v4358_v54 = vld [vmem:[%s3996_s19 + $0x70] sm:$0xff]   ;;  %356 = vst.msk [vmem:[#allocation2 + $0x10] sm:$0xff] %vm353_vm6, %v3837_v49 }
  0x66   : > { %2365 = vrot.lane.b32.xlu0 %v2225_v61, %s3950_s26  ;;  %v613_v61 = vor.u32 %v611_v35, %v609_v50  ;;  %v4334_v21 = vrot.slane %v615_v42, 1  ;;  %v4361_v63 = vld [vmem:[%s3996_s19 + $0x30] sm:$0xff]   ;;  %v4370_v35 = vld [vmem:[%s3996_s19 + $0x38] sm:$0xff]  }
  0x67   : > { %2381 = vrot.lane.b32.xlu1 %v2297_v60, %s3950_s26  ;;  %v551_v60 = vshll.u32 %v4317_v0, 16  ;;  %v3824_v42 = vld [vmem:[%s3996_s19 + $0x30] sm:$0xff]   ;;  %v1104_v6 = vrot.slane %v4361_v63, 1  ;;  %v3827_v63 = vld [vmem:[%s3996_s19 + $0x38] sm:$0xff]  }
  0x68   : > { %v1384_v49 = vshll.u32 %v3824_v42, 16 }
  0x6a   : > { %2367 = vrot.lane.b32.xlu0 %v2234_v38, %s3950_s26  ;;  %v4340_v38 = vrot.slane %v551_v60, 1  ;;  %v3841_v60 = vld [vmem:[%s3996_s19 + $0x50] sm:$0xff]  }
  0x6b   : > { %2383 = vrot.lane.b32.xlu1 %v2306_v37, %s3950_s26  ;;  %v3815_v37 = vld [vmem:[%s3996_s19 + $0x68] sm:$0xff]   ;;  %364 = vst.msk [vmem:[#allocation2 + $0x50] sm:$0xff] %vm353_vm6, %v3841_v60 }
  0x6c   : > { %v880_v33 = vrot.slane %v3815_v37, 1  ;;  %v554_v50 = vsel %vm502_vm2, %v549_v56, %v4340_v38  ;;  %v866_v37 = vrot.slane %v4348_v27, 1  ;;  %v1456_v56 = vshll.u32 %v3823_v39, 16  ;;  %v3866_v27 = vld [vmem:[%s3996_s19 + $0x88] sm:$0xff]  }
  0x6e   : > { %2606 = vrot.lane.b32.xlu0 %v2571_v47, %s3951_s27  ;;  %v864_v47 = vrot.slane %v3816_v36, 1  ;;  %v1106_v36 = vrot.slane %v4370_v35, 1  ;;  %v1458_v60 = vrot.slane %v1456_v56, 2 }
  0x6f   : > { %2622 = vrot.lane.b32.xlu1 %v2587_v41, %s3951_s27  ;;  %v618_v41 = vsel %vm502_vm2, %v613_v61, %v4334_v21 }
  0x70   : > { %v865_v61 = vsel %vm854_vm0, %v862_v17, %v864_v47  ;;  %v1122_v17 = vrot.slane %v4364_v7, 1 }
  0x72   : > { %659 = vrot.lane.b32.xlu0 %v546_v2, %s3947_s23  ;;  %v881_v2 = vsel %vm854_vm0, %v878_v15, %v880_v33  ;;  %v1120_v15 = vrot.slane %v4358_v54, 1  ;;  %v867_v54 = vsel %vm854_vm0, %v864_v47, %v866_v37 }
  0x73   : > { %675 = vrot.lane.b32.xlu1 %v610_v29, %s3947_s23  ;;  %v3838_v29 = vld [vmem:[%s5170_s1] sm:$0xff]  }
  0x74   : > { %3663 = vmatprep.subr.bf16.mxu0 %v3838_v29  ;;  %3705 = vmatprep.subr.bf16.mxu1 %v3838_v29  ;;  %v1121_v47 = vsel %vm854_vm0, %v1118_v45, %v1120_v15  ;;  %v1123_v45 = vsel %vm854_vm0, %v1120_v15, %v1122_v17 }
  0x75   : > { %3664 = vmatpush3.bf16.msra.mxu0 %v3838_v29  ;;  %3708 = vmatpush3.bf16.msra.mxu1 %v3838_v29  ;;  %v3846_v29 = vld [vmem:[%s3996_s19 + $0x18] sm:$0xff]  }
  0x76   : > { %2608 = vrot.lane.b32.xlu0 %v2573_v19, %s3951_s27  ;;  %v1453_v19 = vshrl.u32 %v3823_v39, 16  ;;  %v883_v39 = vsel %vm854_vm0, %v880_v33, %v882_v20  ;;  %357 = vst.msk [vmem:[#allocation2 + $0x18] sm:$0xff] %vm353_vm6, %v3846_v29  ;;  %v3847_v33 = vld [vmem:[%s5170_s1 + $0x10] ss:$0 sps:$4 sm:$0x33]   ;;  %v1393_v29 = vshll.u32 %v3827_v63, 16 }
  0x77   : > { %2624 = vrot.lane.b32.xlu1 %v2589_v12, %s3951_s27  ;;  %v3842_v12 = vld [vmem:[%s5170_s1 + $0x8] sm:$0xff]   ;;  %v2777_v56 = vsel %vm2775_vm7, %v3847_v33, 0 }
  0x78   : > { %3665 = vmatprep.subr.bf16.mxu0 %v3842_v12  ;;  %3706 = vmatprep.subr.bf16.mxu1 %v3842_v12 }
  0x79   : > { %3666 = vmatpush3.bf16.msra.mxu0 %v3842_v12  ;;  %3709 = vmatpush3.bf16.msra.mxu1 %v3842_v12  ;;  %v1390_v12 = vshrl.u32 %v3827_v63, 16  ;;  %v1395_v63 = vrot.slane %v1393_v29, 2 }
  0x7a   : > { %661 = vrot.lane.b32.xlu0 %v554_v50, %s3947_s23  ;;  %v3845_v50 = vld [vmem:[%s3996_s19 + $0x58] sm:$0xff]   ;;  %3711 = vmatprep.subr.msk.bf16.mxu0 %vm2775_vm7, %v3847_v33 }
  0x7b   : > { %677 = vrot.lane.b32.xlu1 %v618_v41, %s3947_s23  ;;  %v1381_v41 = vshrl.u32 %v3824_v42, 16  ;;  %365 = vst.msk [vmem:[#allocation2 + $0x58] sm:$0xff] %vm353_vm6, %v3845_v50  ;;  %v1105_v50 = vsel %vm854_vm0, %v1102_v48, %v1104_v6  ;;  %3712 = vmatprep.subr.msk.bf16.mxu1 %vm2775_vm7, %v3847_v33  ;;  %vm2720_vm7 = vcmask 293888  }
  0x7d   : > { %v1383_v42 = vrot.slane %v1381_v41, 1  ;;  %3668 = vmatpush3.bf16.msra.mxu0 %v2777_v56  ;;  %3710 = vmatpush3.bf16.msra.mxu1 %v2777_v56  ;;  %v1107_v41 = vsel %vm854_vm0, %v1104_v6, %v1106_v36 }
  0x7e   : > { %900 = vrot.lane.b32.xlu0 %v865_v61, %s3945_s21  ;;  %v1386_v61 = vrot.slane %v1384_v49, 2 }
  0x7f   : > { %916 = vrot.lane.b32.xlu1 %v881_v2, %s3945_s21  ;;  %v1455_v2 = vrot.slane %v1453_v19, 1  ;;  %v1465_v19 = vshll.u32 %v3826_v4, 16  ;;  %v1464_v4 = vrot.slane %v1462_v26, 1 }
  0x80   : > { %v1387_v49 = vor.u32 %v1386_v61, %v1383_v42 }
  0x81   : > { %v1459_v30 = vor.u32 %v1458_v60, %v1455_v2  ;;  %v1467_v48 = vrot.slane %v1465_v19, 2  ;;  %v3829_v2 = vld [vmem:[%s3996_s19 + $0x70] sm:$0xff]   ;;  %v4448_v19 = vld [vmem:[%s3996_s19 + $0x78] sm:$0xff]  }
  0x82   : > { %902 = vrot.lane.b32.xlu0 %v867_v54, %s3945_s21  ;;  %v1392_v54 = vrot.slane %v1390_v12, 1  ;;  %v3830_v60 = vld [vmem:[%s3996_s19 + $0x30] sm:$0xff]   ;;  %v1388_v6 = vsel %vm1335_vm3, %v4199_v31, %v1387_v49  ;;  %v1735_v61 = vrot.slane %v3829_v2, 2  ;;  %v4453_v12 = vld [vmem:[%s3996_s19 + $0x38] sm:$0xff]  }
  0x83   : > { %918 = vrot.lane.b32.xlu1 %v883_v39, %s3945_s21  ;;  %v1460_v15 = vsel %vm1335_vm3, %v4194_v23, %v1459_v30  ;;  %v4435_v26 = vor.u32 %v1467_v48, %v1464_v4  ;;  %v3839_v4 = vld [vmem:[%s3996_s19 + $0x78] sm:$0xff]  }
  0x84   : > { %v4441_v42 = vor.u32 %v1395_v63, %v1392_v54  ;;  %v1736_v48 = vsel %vm1709_vm1, %v1733_v53, %v1735_v61  ;;  %v2308_v34 = vshrl.u32 %v3839_v4, 16 }
  0x85   : > { %v1469_v23 = vsel %vm1335_vm3, %v1459_v30, %v4435_v26  ;;  %v4461_v30 = vld [vmem:[%s3996_s19 + $0x38] sm:$0xff]  }
  0x86   : > { %1140 = vrot.lane.b32.xlu0 %v1105_v50, %s3944_s20  ;;  %v1397_v31 = vsel %vm1335_vm3, %v1387_v49, %v4441_v42  ;;  %v1719_v50 = vrot.slane %v3830_v60, 2  ;;  %v3840_v49 = vld [vmem:[%s3996_s19 + $0x38] sm:$0xff]   ;;  %v2311_v60 = vshll.u32 %v3839_v4, 16 }
  0x87   : > { %1156 = vrot.lane.b32.xlu1 %v1121_v47, %s3944_s20  ;;  %v2239_v4 = vshll.u32 %v3840_v49, 16 }
  0x88   : > { %v1133_v28 = vpop.permute.xlu0 %1132  ;;  %v1720_v63 = vsel %vm1709_vm1, %v1717_v55, %v1719_v50  ;;  %v3843_v55 = vld [vmem:[%s3996_s19 + $0x80] sm:$0xff]  }
  0x89   : > { %v893_v39 = vpop.permute.xlu1 %892 }
  0x8a   : > { %1142 = vrot.lane.b32.xlu0 %v1107_v41, %s3944_s20  ;;  %v1737_v41 = vrot.slane %v4448_v19, 2 }
  0x8b   : > { %1158 = vrot.lane.b32.xlu1 %v1123_v45, %s3944_s20  ;;  %v4456_v45 = vld [vmem:[%s3996_s19 + $0x78] sm:$0xff]  }
  0x8c   : > { %v4431_v33 = vpop.permute.xlu0 %1747  ;;  %v1975_v53 = vrot.slane %v4456_v45, 2  ;;  %v1959_v45 = vrot.slane %v4461_v30, 2  ;;  %v2317_v30 = vshrl.u32 %v3843_v55, 16 }
  0x8d   : > { %v895_v47 = vpop.permute.xlu1 %894 }
  0x8e   : > { %1514 = vrot.lane.b32.xlu0 %v1388_v6, %s3948_s24  ;;  %v2236_v6 = vshrl.u32 %v3840_v49, 16  ;;  %v2313_v49 = vrot.slane %v2311_v60, 3 }
  0x8f   : > { %1530 = vrot.lane.b32.xlu1 %v1460_v15, %s3948_s24  ;;  %v4477_v15 = vld [vmem:[%s3996_s19 + $0x80] sm:$0xff]  }
  0x90   : > { %v652_v29 = vpop.permute.xlu0 %651 }
  0x91   : > { %v1135_v56 = vpop.permute.xlu1 %1134  ;;  %706 = vst.msk [vmem:[#allocation2] sm:$0xff] %vm705_vm8, %v652_v29 }
  0x92   : > { %947 = vst.msk [vmem:[#allocation2] sm:$0xff] %vm946_vm9, %v893_v39  ;;  %1516 = vrot.lane.b32.xlu0 %v1397_v31, %s3948_s24  ;;  %v1721_v39 = vrot.slane %v4453_v12, 2 }
  0x93   : > { %1532 = vrot.lane.b32.xlu1 %v1469_v23, %s3948_s24  ;;  %1187 = vst.msk [vmem:[#allocation2] sm:$0xff] %vm1186_vm10, %v1133_v28  ;;  %v1738_v28 = vsel %vm1709_vm1, %v1735_v61, %v1737_v41  ;;  %v3844_v23 = vld [vmem:[%s3996_s19 + $0x40] sm:$0xff]   ;;  %v1961_v61 = vrot.slane %v4480_v32, 2 }
  0x94   : > { %v654_v2 = vpop.permute.xlu0 %653  ;;  %v1722_v29 = vsel %vm1709_vm1, %v1719_v50, %v1721_v39  ;;  %v2310_v50 = vrot.slane %v2308_v34, 2  ;;  %v2248_v43 = vshll.u32 %v3844_v23, 16 }
  0x95   : > { %v1750_v54 = vpop.permute.xlu1 %1749  ;;  %707 = vst.msk [vmem:[#allocation2 + $0x8] sm:$0xff] %vm705_vm8, %v654_v2  ;;  %v2320_v2 = vshll.u32 %v3843_v55, 16 }
  0x96   : > { %948 = vst.msk [vmem:[#allocation2 + $0x8] sm:$0xff] %vm946_vm9, %v895_v47  ;;  %1755 = vrot.lane.b32.xlu0 %v1720_v63, %s3946_s22  ;;  %v2238_v63 = vrot.slane %v2236_v6, 2  ;;  %v1962_v6 = vsel %vm1709_vm1, %v1959_v45, %v1961_v61 }
  0x97   : > { %1771 = vrot.lane.b32.xlu1 %v1736_v48, %s3946_s22  ;;  %1188 = vst.msk [vmem:[#allocation2 + $0x8] sm:$0xff] %vm1186_vm10, %v1135_v56  ;;  %v1977_v48 = vrot.slane %v4477_v15, 2  ;;  %v1976_v56 = vsel %vm1709_vm1, %v1973_v1, %v1975_v53  ;;  %v2322_v34 = vrot.slane %v2320_v2, 3 }
  0x98   : > { %v1507_v47 = vpop.permute.xlu0 %1506 }
  0x99   : > { %v1509_v31 = vpop.permute.xlu1 %1508  ;;  %1561 = vst.msk [vmem:[#allocation2] sm:$0xff] %vm1560_vm11, %v1507_v47  ;;  %v1978_v44 = vsel %vm1709_vm1, %v1975_v53, %v1977_v48  ;;  %v3876_v53 = vld [vmem:[%s3996_s19 + $0x60] sm:$0xff]  }
  0x9a   : > { %1562 = vst.msk [vmem:[#allocation2 + $0x8] sm:$0xff] %vm1560_vm11, %v1509_v31  ;;  %1757 = vrot.lane.b32.xlu0 %v1722_v29, %s3946_s22  ;;  %v2245_v31 = vshrl.u32 %v3844_v23, 16  ;;  %v2250_v29 = vrot.slane %v2248_v43, 3  ;;  %v619_v43 = vshrl.u32 %v4309_v46, 16  ;;  %v3883_v46 = vld [vmem:[%s3996_s19 + $0x28] sm:$0xff]  }
  0x9b   : > { %1773 = vrot.lane.b32.xlu1 %v1738_v28, %s3946_s22  ;;  %1803 = vst.msk [vmem:[#allocation2 + $0x8] sm:$0xff] %vm1801_vm12, %v1750_v54  ;;  %1802 = vst.msk [vmem:[#allocation2] sm:$0xff] %vm1801_vm12, %v4431_v33  ;;  %v1960_v54 = vsel %vm1709_vm1, %v1957_v24, %v1959_v45  ;;  %v2241_v28 = vrot.slane %v2239_v4, 3  ;;  %v2319_v33 = vrot.slane %v2317_v30, 2  ;;  %v2314_v24 = vor.u32 %v2313_v49, %v2310_v50  ;;  %v4523_v4 = vld [vmem:[%s3996_s19 + $0x78] sm:$0xff]   ;;  %v3877_v49 = vld [vmem:[%s3996_s19 + $0x20] sm:$0xff]  }
  0x9c   : > { %v1988_v1 = vpop.permute.xlu0 %1987  ;;  %v2247_v60 = vrot.slane %v2245_v31, 2  ;;  %v4527_v30 = vld [vmem:[%s3996_s19 + $0x78] sm:$0xff]   ;;  %366 = vst.msk [vmem:[#allocation2 + $0x60] sm:$0xff] %vm353_vm6, %v3876_v53  ;;  %358 = vst.msk [vmem:[#allocation2 + $0x20] sm:$0xff] %vm353_vm6, %v3877_v49  ;;  %v4581_v53 = vld [vmem:[%s3996_s19 + $0x80] sm:$0xff]  }
  0x9d   : > { %v1990_v47 = vpop.permute.xlu1 %1989  ;;  %2042 = vst.msk [vmem:[#allocation2] sm:$0xff] %vm2041_vm13, %v1988_v1  ;;  %v2242_v23 = vor.u32 %v2241_v28, %v2238_v63  ;;  %v4533_v50 = vld [vmem:[%s3996_s19 + $0x38] sm:$0xff]   ;;  %v2315_v45 = vsel %vm2190_vm4, %v4278_v10, %v2314_v24  ;;  %v4539_v63 = vor.u32 %v2322_v34, %v2319_v33  ;;  %v2590_v10 = vrot.slane %v4523_v4, 3 }
  0x9e   : > { %2043 = vst.msk [vmem:[#allocation2 + $0x8] sm:$0xff] %vm2041_vm13, %v1990_v47  ;;  %1995 = vrot.lane.b32.xlu0 %v1960_v54, %s3949_s25  ;;  %v4544_v47 = vor.u32 %v2250_v29, %v2247_v60  ;;  %v4547_v54 = vld [vmem:[%s3996_s19 + $0x38] sm:$0xff]   ;;  %v623_v1 = vshll.u32 %v4527_v30, 16  ;;  %v2574_v34 = vrot.slane %v4533_v50, 3  ;;  %v555_v60 = vshrl.u32 %v4317_v0, 16  ;;  %v3882_v29 = vld [vmem:[%s3996_s19 + $0x68] sm:$0xff]  }
  0x9f   : > { %2011 = vrot.lane.b32.xlu1 %v1976_v56, %s3949_s25  ;;  %v2243_v31 = vsel %vm2190_vm4, %v4283_v14, %v2242_v23  ;;  %v2324_v14 = vsel %vm2190_vm4, %v2314_v24, %v4539_v63  ;;  %v4566_v24 = vld [vmem:[%s3996_s19 + $0x80] sm:$0xff]   ;;  %v2591_v0 = vsel %vm2564_vm5, %v2588_v62, %v2590_v10  ;;  %v621_v4 = vor.u32 %v619_v43, %v4334_v21 }
  0xa0   : > { %v2362_v56 = vpop.permute.xlu0 %2361  ;;  %367 = vst.msk [vmem:[#allocation2 + $0x68] sm:$0xff] %vm353_vm6, %v3882_v29  ;;  %359 = vst.msk [vmem:[#allocation2 + $0x28] sm:$0xff] %vm353_vm6, %v3883_v46  ;;  %v2575_v49 = vsel %vm2564_vm5, %v2572_v13, %v2574_v34  ;;  %v627_v13 = vshrl.u32 %v4527_v30, 16 }
  0xa1   : > { %v2364_v55 = vpop.permute.xlu1 %2363  ;;  %2416 = vst.msk [vmem:[#allocation2] sm:$0xff] %vm2415_vm14, %v2362_v56  ;;  %v625_v56 = vrot.slane %v623_v1, 1 }
  0xa2   : > { %2417 = vst.msk [vmem:[#allocation2 + $0x8] sm:$0xff] %vm2415_vm14, %v2364_v55  ;;  %1997 = vrot.lane.b32.xlu0 %v1962_v6, %s3949_s25  ;;  %v559_v55 = vshll.u32 %v4547_v54, 16 }
  0xa3   : > { %2013 = vrot.lane.b32.xlu1 %v1978_v44, %s3949_s25  ;;  %v2252_v44 = vsel %vm2190_vm4, %v2242_v23, %v4544_v47  ;;  %v4573_v23 = vld [vmem:[%s3996_s19 + $0x40] sm:$0xff]   ;;  %v626_v51 = vsel %vm502_vm2, %v621_v4, %v625_v56 }
  0xa4   : > { %v2603_v28 = vpop.permute.xlu0 %2602  ;;  %v2576_v1 = vrot.slane %v4573_v23, 3 }
  0xa5   : > { %v656_v2 = vpop.permute.xlu1 %655  ;;  %2657 = vst.msk [vmem:[#allocation2] sm:$0xff] %vm2656_vm15, %v2603_v28 }
  0xa6   : > { %708 = vst.msk [vmem:[#allocation2 + $0x10] sm:$0xff] %vm705_vm8, %v656_v2  ;;  %2369 = vrot.lane.b32.xlu0 %v2243_v31, %s3950_s26  ;;  %v561_v2 = vrot.slane %v559_v55, 1  ;;  %v2592_v31 = vrot.slane %v4566_v24, 3  ;;  %v2577_v46 = vsel %vm2564_vm5, %v2574_v34, %v2576_v1 }
  0xa7   : > { %2385 = vrot.lane.b32.xlu1 %v2315_v45, %s3950_s26  ;;  %v557_v45 = vor.u32 %v555_v60, %v4340_v38  ;;  %v631_v38 = vshll.u32 %v4581_v53, 16 }
  0xa8   : > { %v672_v6 = vpop.permute.xlu0 %671  ;;  %v2593_v30 = vsel %vm2564_vm5, %v2590_v10, %v2592_v31 }
  0xa9   : > { %v2605_v33 = vpop.permute.xlu1 %2604  ;;  %716 = vst.msk [vmem:[#allocation2 + $0x50] sm:$0xff] %vm705_vm8, %v672_v6  ;;  %v562_v43 = vsel %vm502_vm2, %v557_v45, %v561_v2  ;;  %v4613_v55 = vrot.slane %v631_v38, 1  ;;  %v3856_v6 = vld [vmem:[%s3996_s19 + $0x78] sm:$0xff]  }
  0xaa   : > { %2658 = vst.msk [vmem:[#allocation2 + $0x8] sm:$0xff] %vm2656_vm15, %v2605_v33  ;;  %2371 = vrot.lane.b32.xlu0 %v2252_v44, %s3950_s26  ;;  %v563_v33 = vshrl.u32 %v4547_v54, 16  ;;  %v567_v44 = vshll.u32 %v4590_v40, 16  ;;  %v629_v54 = vor.u32 %v627_v13, %v625_v56  ;;  %v884_v34 = vrot.slane %v3856_v6, 1  ;;  %v4629_v56 = vld [vmem:[%s3996_s19 + $0x80] sm:$0xff]  }
  0xab   : > { %2387 = vrot.lane.b32.xlu1 %v2324_v14, %s3950_s26  ;;  %v3864_v13 = vld [vmem:[%s3996_s19 + $0x80] sm:$0xff]  }
  0xac   : > { %v658_v62 = vpop.permute.xlu0 %657  ;;  %v2675_v21 = vld [vmem:[#allocation2] sm:$0xff]  ;;  %v4619_v4 = vrot.slane %v567_v44, 1  ;;  %v634_v10 = vsel %vm502_vm2, %v629_v54, %v4613_v55  ;;  %v885_v38 = vsel %vm854_vm0, %v882_v20, %v884_v34  ;;  %v4657_v20 = vld [vmem:[%s3996_s19 + $0x48] sm:$0xff]   ;;  %v1471_v6 = vshrl.u32 %v3864_v13, 16 }
  0xad   : > { %v674_v50 = vpop.permute.xlu1 %673  ;;  %709 = vst.msk [vmem:[#allocation2 + $0x18] sm:$0xff] %vm705_vm8, %v658_v62  ;;  %3669 = vmatprep.mubr.msk.bf16.mxu0 %vm2720_vm7, %v2675_v21  ;;  %v4634_v21 = vld [vmem:[%s3996_s19 + $0x40] sm:$0xff]  }
  0xae   : > { %717 = vst.msk [vmem:[#allocation2 + $0x58] sm:$0xff] %vm705_vm8, %v674_v50  ;;  %2610 = vrot.lane.b32.xlu0 %v2575_v49, %s3951_s27  ;;  %v3857_v50 = vld [vmem:[%s3996_s19 + $0x38] sm:$0xff]  }
  0xaf   : > { %2626 = vrot.lane.b32.xlu1 %v2591_v0, %s3951_s27  ;;  %v565_v0 = vor.u32 %v563_v33, %v561_v2  ;;  %v868_v62 = vrot.slane %v3857_v50, 1 }
  0xb0   : > { %v897_v60 = vpop.permute.xlu0 %896 }
  0xb1   : > { %v913_v28 = vpop.permute.xlu1 %912  ;;  %v2676_v14 = vld [vmem:[#allocation2 + $0x8] sm:$0xff]  ;;  %949 = vst.msk [vmem:[#allocation2 + $0x10] sm:$0xff] %vm946_vm9, %v897_v60  ;;  %v570_v2 = vsel %vm502_vm2, %v565_v0, %v4619_v4  ;;  %v869_v44 = vsel %vm854_vm0, %v866_v37, %v868_v62  ;;  %v870_v60 = vrot.slane %v4634_v21, 1  ;;  %v3899_v21 = vld [vmem:[%s3996_s19 + $0x98] ss:$0 sps:$4 sm:$0x33]  }
  0xb2   : > { %957 = vst.msk [vmem:[#allocation2 + $0x50] sm:$0xff] %vm946_vm9, %v913_v28  ;;  %3670 = vmatmul.mubr.msk.bf16.vlgmr.msra.gmra.mrb[0].mxu0 %vm2720_vm7, %v2676_v14  ;;  %663 = vrot.lane.b32.xlu0 %v562_v43, %s3947_s23  ;;  %v886_v28 = vrot.slane %v4629_v56, 1  ;;  %v3860_v14 = vld [vmem:[%s3996_s19 + $0x80] sm:$0xff]  }
  0xb3   : > { %679 = vrot.lane.b32.xlu1 %v626_v51, %s3947_s23  ;;  %v3865_v43 = vld [vmem:[%s3996_s19 + $0x40] sm:$0xff]  }
  0xb4   : > { %v899_v49 = vpop.permute.xlu0 %898  ;;  %v887_v37 = vsel %vm854_vm0, %v884_v34, %v886_v28  ;;  %v1399_v0 = vshrl.u32 %v3865_v43, 16 }
  0xb5   : > { %v915_v29 = vpop.permute.xlu1 %914  ;;  %950 = vst.msk [vmem:[#allocation2 + $0x18] sm:$0xff] %vm946_vm9, %v899_v49  ;;  %v871_v49 = vsel %vm854_vm0, %v868_v62, %v870_v60 }
  0xb6   : > { %958 = vst.msk [vmem:[#allocation2 + $0x58] sm:$0xff] %vm946_vm9, %v915_v29  ;;  %2612 = vrot.lane.b32.xlu0 %v2577_v46, %s3951_s27  ;;  %v1474_v29 = vshll.u32 %v3864_v13, 16  ;;  %v1124_v46 = vrot.slane %v3860_v14, 1  ;;  %v1126_v13 = vrot.slane %v4654_v11, 1  ;;  %v1480_v14 = vshrl.u32 %v3866_v27, 16 }
  0xb7   : > { %2628 = vrot.lane.b32.xlu1 %v2593_v30, %s3951_s27  ;;  %v3861_v30 = vld [vmem:[%s3996_s19 + $0x40] sm:$0xff]  }
  0xb8   : > { %v1137_v51 = vpop.permute.xlu0 %1136  ;;  %v1476_v34 = vrot.slane %v1474_v29, 2  ;;  %v1125_v62 = vsel %vm854_vm0, %v1122_v17, %v1124_v46  ;;  %v1127_v7 = vsel %vm854_vm0, %v1124_v46, %v1126_v13  ;;  %v1482_v17 = vrot.slane %v1480_v14, 1 }
  0xb9   : > { %v1153_v45 = vpop.permute.xlu1 %1152  ;;  %1189 = vst.msk [vmem:[#allocation2 + $0x10] sm:$0xff] %vm1186_vm10, %v1137_v51 }
  0xba   : > { %1197 = vst.msk [vmem:[#allocation2 + $0x50] sm:$0xff] %vm1186_vm10, %v1153_v45  ;;  %665 = vrot.lane.b32.xlu0 %v570_v2, %s3947_s23  ;;  %v1402_v45 = vshll.u32 %v3865_v43, 16  ;;  %v3867_v2 = vld [vmem:[%s3996_s19 + $0x48] sm:$0xff]   ;;  %v1401_v43 = vrot.slane %v1399_v0, 1 }
  0xbb   : > { %681 = vrot.lane.b32.xlu1 %v634_v10, %s3947_s23  ;;  %v1108_v10 = vrot.slane %v3861_v30, 1  ;;  %v1483_v30 = vshll.u32 %v3866_v27, 16 }
  0xbc   : > { %v1139_v54 = vpop.permute.xlu0 %1138  ;;  %v1404_v29 = vrot.slane %v1402_v45, 2 }
  0xbd   : > { %v1155_v33 = vpop.permute.xlu1 %1154  ;;  %1190 = vst.msk [vmem:[#allocation2 + $0x18] sm:$0xff] %vm1186_vm10, %v1139_v54 }
  0xbe   : > { %1198 = vst.msk [vmem:[#allocation2 + $0x58] sm:$0xff] %vm1186_vm10, %v1155_v33  ;;  %904 = vrot.lane.b32.xlu0 %v869_v44, %s3945_s21  ;;  %v1473_v33 = vrot.slane %v1471_v6, 1  ;;  %v3906_v44 = vld [vmem:[%s3996_s19 + $0x70] sm:$0xff]   ;;  %v1109_v6 = vsel %vm854_vm0, %v1106_v36, %v1108_v10  ;;  %v1485_v36 = vrot.slane %v1483_v30, 2  ;;  %v1405_v45 = vor.u32 %v1404_v29, %v1401_v43 }
  0xbf   : > { %920 = vrot.lane.b32.xlu1 %v885_v38, %s3945_s21  ;;  %v1110_v38 = vrot.slane %v4657_v20, 1  ;;  %368 = vst.msk [vmem:[#allocation2 + $0x70] sm:$0xff] %vm353_vm6, %v3906_v44 }
  0xc0   : > { %v1511_v51 = vpop.permute.xlu0 %1510  ;;  %v1477_v35 = vor.u32 %v1476_v34, %v1473_v33  ;;  %v4703_v33 = vor.u32 %v1485_v36, %v1482_v17  ;;  %v3869_v34 = vld [vmem:[%s3996_s19 + $0x40] sm:$0xff]   ;;  %v1406_v43 = vsel %vm1335_vm3, %v4441_v42, %v1405_v45  ;;  %v3872_v36 = vld [vmem:[%s3996_s19 + $0x88] sm:$0xff]  }
  0xc1   : > { %v1527_v50 = vpop.permute.xlu1 %1526  ;;  %1563 = vst.msk [vmem:[#allocation2 + $0x10] sm:$0xff] %vm1560_vm11, %v1511_v51  ;;  %v1411_v51 = vshll.u32 %v3867_v2, 16  ;;  %v1111_v0 = vsel %vm854_vm0, %v1108_v10, %v1110_v38  ;;  %v3868_v10 = vld [vmem:[%s3996_s19 + $0x80] sm:$0xff]   ;;  %v1979_v19 = vrot.slane %v3872_v36, 2 }
  0xc2   : > { %1571 = vst.msk [vmem:[#allocation2 + $0x50] sm:$0xff] %vm1560_vm11, %v1527_v50  ;;  %906 = vrot.lane.b32.xlu0 %v871_v49, %s3945_s21  ;;  %v1408_v50 = vshrl.u32 %v3867_v2, 16  ;;  %v1478_v46 = vsel %vm1335_vm3, %v4435_v26, %v1477_v35  ;;  %v1487_v26 = vsel %vm1335_vm3, %v1477_v35, %v4703_v33  ;;  %v1739_v42 = vrot.slane %v3868_v10, 2  ;;  %v3873_v35 = vld [vmem:[%s3996_s19 + $0x48] sm:$0xff]   ;;  %v4748_v10 = vld [vmem:[%s3996_s19 + $0x90] sm:$0xff]  }
  0xc3   : > { %922 = vrot.lane.b32.xlu1 %v887_v37, %s3945_s21  ;;  %v3907_v37 = vld [vmem:[%s3996_s19 + $0x30] sm:$0xff]   ;;  %v1413_v44 = vrot.slane %v1411_v51, 2 }
  0xc4   : > { %v1513_v49 = vpop.permute.xlu0 %1512  ;;  %360 = vst.msk [vmem:[#allocation2 + $0x30] sm:$0xff] %vm353_vm6, %v3907_v37  ;;  %v1410_v2 = vrot.slane %v1408_v50, 1  ;;  %v4721_v50 = vld [vmem:[%s3996_s19 + $0x88] sm:$0xff]  }
  0xc5   : > { %v1529_v54 = vpop.permute.xlu1 %1528  ;;  %1564 = vst.msk [vmem:[#allocation2 + $0x18] sm:$0xff] %vm1560_vm11, %v1513_v49  ;;  %v1723_v49 = vrot.slane %v3869_v34, 2  ;;  %v4751_v34 = vld [vmem:[%s3996_s19 + $0x50] sm:$0xff]  }
  0xc6   : > { %1572 = vst.msk [vmem:[#allocation2 + $0x58] sm:$0xff] %vm1560_vm11, %v1529_v54  ;;  %1144 = vrot.lane.b32.xlu0 %v1109_v6, %s3944_s20  ;;  %v3911_v54 = vld [vmem:[%s3996_s19 + $0x78] sm:$0xff]   ;;  %v4710_v30 = vor.u32 %v1413_v44, %v1410_v2 }
  0xc7   : > { %1160 = vrot.lane.b32.xlu1 %v1125_v62, %s3944_s20  ;;  %369 = vst.msk [vmem:[#allocation2 + $0x78] sm:$0xff] %vm353_vm6, %v3911_v54  ;;  %v3912_v6 = vld [vmem:[%s3996_s19 + $0x38] sm:$0xff]   ;;  %v1724_v44 = vsel %vm1709_vm1, %v1721_v39, %v1723_v49  ;;  %v3879_v54 = vld [vmem:[%s3996_s19 + $0x48] sm:$0xff]  }
  0xc8   : > { %v1752_v62 = vpop.permute.xlu0 %1751  ;;  %361 = vst.msk [vmem:[#allocation2 + $0x38] sm:$0xff] %vm353_vm6, %v3912_v6  ;;  %v1415_v37 = vsel %vm1335_vm3, %v1405_v45, %v4710_v30  ;;  %v3878_v45 = vld [vmem:[%s3996_s19 + $0x88] sm:$0xff]  }
  0xc9   : > { %v1768_v27 = vpop.permute.xlu1 %1767  ;;  %1804 = vst.msk [vmem:[#allocation2 + $0x10] sm:$0xff] %vm1801_vm12, %v1752_v62  ;;  %v2326_v39 = vshrl.u32 %v3878_v45, 16 }
  0xca   : > { %1812 = vst.msk [vmem:[#allocation2 + $0x50] sm:$0xff] %vm1801_vm12, %v1768_v27  ;;  %1146 = vrot.lane.b32.xlu0 %v1111_v0, %s3944_s20  ;;  %v1740_v27 = vsel %vm1709_vm1, %v1737_v41, %v1739_v42  ;;  %v1741_v0 = vrot.slane %v4721_v50, 2  ;;  %v1963_v41 = vrot.slane %v3873_v35, 2  ;;  %v1965_v35 = vrot.slane %v4751_v34, 2 }
  0xcb   : > { %1162 = vrot.lane.b32.xlu1 %v1127_v7, %s3944_s20  ;;  %v4726_v7 = vld [vmem:[%s3996_s19 + $0x48] sm:$0xff]  }
  0xcc   : > { %v1754_v29 = vpop.permute.xlu0 %1753  ;;  %v1725_v62 = vrot.slane %v4726_v7, 2  ;;  %v1742_v12 = vsel %vm1709_vm1, %v1739_v42, %v1741_v0  ;;  %v1980_v42 = vsel %vm1709_vm1, %v1977_v48, %v1979_v19  ;;  %v1964_v36 = vsel %vm1709_vm1, %v1961_v61, %v1963_v41  ;;  %v3910_v7 = vld [vmem:[%s3996_s19 + $0xa0] ss:$0 sps:$4 sm:$0x77]  }
  0xcd   : > { %v1770_v14 = vpop.permute.xlu1 %1769  ;;  %1805 = vst.msk [vmem:[#allocation2 + $0x18] sm:$0xff] %vm1801_vm12, %v1754_v29 }
  0xce   : > { %1813 = vst.msk [vmem:[#allocation2 + $0x58] sm:$0xff] %vm1801_vm12, %v1770_v14  ;;  %1518 = vrot.lane.b32.xlu0 %v1406_v43, %s3948_s24  ;;  %v2329_v14 = vshll.u32 %v3878_v45, 16  ;;  %v3880_v43 = vld [vmem:[%s3996_s19 + $0x90] sm:$0xff]   ;;  %v1726_v29 = vsel %vm1709_vm1, %v1723_v49, %v1725_v62  ;;  %v1981_v49 = vrot.slane %v4748_v10, 2 }
  0xcf   : > { %1534 = vrot.lane.b32.xlu1 %v1478_v46, %s3948_s24 }
  0xd0   : > { %v1992_v17 = vpop.permute.xlu0 %1991  ;;  %v2331_v45 = vrot.slane %v2329_v14, 3  ;;  %v1982_v48 = vsel %vm1709_vm1, %v1979_v19, %v1981_v49  ;;  %v4788_v19 = vld [vmem:[%s3996_s19 + $0x88] sm:$0xff]  }
  0xd1   : > { %v2008_v51 = vpop.permute.xlu1 %2007  ;;  %2044 = vst.msk [vmem:[#allocation2 + $0x10] sm:$0xff] %vm2041_vm13, %v1992_v17 }
  0xd2   : > { %2052 = vst.msk [vmem:[#allocation2 + $0x50] sm:$0xff] %vm2041_vm13, %v2008_v51  ;;  %1520 = vrot.lane.b32.xlu0 %v1415_v37, %s3948_s24  ;;  %v2257_v51 = vshll.u32 %v3879_v54, 16  ;;  %v3881_v37 = vld [vmem:[%s3996_s19 + $0x50] sm:$0xff]  }
  0xd3   : > { %1536 = vrot.lane.b32.xlu1 %v1487_v26, %s3948_s24  ;;  %v2254_v26 = vshrl.u32 %v3879_v54, 16  ;;  %v2263_v15 = vshrl.u32 %v3881_v37, 16 }
  0xd4   : > { %v1994_v46 = vpop.permute.xlu0 %1993 }
  0xd5   : > { %v2010_v2 = vpop.permute.xlu1 %2009  ;;  %2045 = vst.msk [vmem:[#allocation2 + $0x18] sm:$0xff] %vm2041_vm13, %v1994_v46  ;;  %v2256_v46 = vrot.slane %v2254_v26, 2 }
  0xd6   : > { %2053 = vst.msk [vmem:[#allocation2 + $0x58] sm:$0xff] %vm2041_vm13, %v2010_v2  ;;  %1759 = vrot.lane.b32.xlu0 %v1724_v44, %s3946_s22  ;;  %v2335_v2 = vshrl.u32 %v3880_v43, 16  ;;  %v2338_v44 = vshll.u32 %v3880_v43, 16 }
  0xd7   : > { %1775 = vrot.lane.b32.xlu1 %v1740_v27, %s3946_s22  ;;  %v2328_v27 = vrot.slane %v2326_v39, 2 }
  0xd8   : > { %v2366_v17 = vpop.permute.xlu0 %2365  ;;  %v2337_v39 = vrot.slane %v2335_v2, 2  ;;  %v2340_v14 = vrot.slane %v2338_v44, 3 }
  0xd9   : > { %v2382_v6 = vpop.permute.xlu1 %2381  ;;  %2418 = vst.msk [vmem:[#allocation2 + $0x10] sm:$0xff] %vm2415_vm14, %v2366_v17  ;;  %v2332_v61 = vor.u32 %v2331_v45, %v2328_v27  ;;  %v3916_v27 = vld [vmem:[%s3996_s19 + $0x80] sm:$0xff]  }
  0xda   : > { %2426 = vst.msk [vmem:[#allocation2 + $0x50] sm:$0xff] %vm2415_vm14, %v2382_v6  ;;  %1761 = vrot.lane.b32.xlu0 %v1726_v29, %s3946_s22  ;;  %v2266_v6 = vshll.u32 %v3881_v37, 16  ;;  %v1966_v29 = vsel %vm1709_vm1, %v1963_v41, %v1965_v35  ;;  %v4793_v41 = vor.u32 %v2340_v14, %v2337_v39  ;;  %v3917_v45 = vld [vmem:[%s3996_s19 + $0x40] sm:$0xff]  }
  0xdb   : > { %1777 = vrot.lane.b32.xlu1 %v1742_v12, %s3946_s22  ;;  %v2259_v12 = vrot.slane %v2257_v51, 3  ;;  %v2265_v51 = vrot.slane %v2263_v15, 2  ;;  %370 = vst.msk [vmem:[#allocation2 + $0x80] sm:$0xff] %vm353_vm6, %v3916_v27  ;;  %362 = vst.msk [vmem:[#allocation2 + $0x40] sm:$0xff] %vm353_vm6, %v3917_v45  ;;  %v3919_v27 = vld [vmem:[%s3996_s19 + $0x48] sm:$0xff]  }
  0xdc   : > { %v2368_v32 = vpop.permute.xlu0 %2367  ;;  %v2268_v37 = vrot.slane %v2266_v6, 3  ;;  %v635_v6 = vshrl.u32 %v4581_v53, 16  ;;  %363 = vst.msk [vmem:[#allocation2 + $0x48] sm:$0xff] %vm353_vm6, %v3919_v27 }
  0xdd   : > { %v2384_v54 = vpop.permute.xlu1 %2383  ;;  %2419 = vst.msk [vmem:[#allocation2 + $0x18] sm:$0xff] %vm2415_vm14, %v2368_v32  ;;  %v2260_v26 = vor.u32 %v2259_v12, %v2256_v46  ;;  %v4805_v46 = vld [vmem:[%s3996_s19 + $0x48] sm:$0xff]  }
  0xde   : > { %2427 = vst.msk [vmem:[#allocation2 + $0x58] sm:$0xff] %vm2415_vm14, %v2384_v54  ;;  %1999 = vrot.lane.b32.xlu0 %v1964_v36, %s3949_s25  ;;  %v4796_v36 = vld [vmem:[%s3996_s19 + $0x88] sm:$0xff]   ;;  %v4802_v54 = vor.u32 %v2268_v37, %v2265_v51  ;;  %v637_v37 = vor.u32 %v635_v6, %v4613_v55 }
  0xdf   : > { %2015 = vrot.lane.b32.xlu1 %v1980_v42, %s3949_s25  ;;  %v2333_v42 = vsel %vm2190_vm4, %v4539_v63, %v2332_v61  ;;  %v2261_v44 = vsel %vm2190_vm4, %v4544_v47, %v2260_v26  ;;  %v4808_v12 = vld [vmem:[%s3996_s19 + $0x48] sm:$0xff]   ;;  %v2342_v63 = vsel %vm2190_vm4, %v2332_v61, %v4793_v41  ;;  %v2594_v47 = vrot.slane %v4788_v19, 3  ;;  %v3890_v19 = vld [vmem:[%s3996_s19 + $0x90] ss:$0 sps:$4 sm:$0x11]  }
  0xe0   : > { %v2607_v17 = vpop.permute.xlu0 %2606  ;;  %v639_v32 = vshll.u32 %v4796_v36, 16  ;;  %v2270_v14 = vsel %vm2190_vm4, %v2260_v26, %v4802_v54  ;;  %v575_v61 = vshll.u32 %v4808_v12, 16  ;;  %v4832_v26 = vld [vmem:[%s3996_s19 + $0x90] sm:$0xff]   ;;  %v647_v55 = vshll.u32 %v3890_v19, 16 }
  0xe1   : > { %v2623_v43 = vpop.permute.xlu1 %2622  ;;  %2659 = vst.msk [vmem:[#allocation2 + $0x10] sm:$0xff] %vm2656_vm15, %v2607_v17 }
  0xe2   : > { %2667 = vst.msk [vmem:[#allocation2 + $0x50] sm:$0xff] %vm2656_vm15, %v2623_v43  ;;  %2001 = vrot.lane.b32.xlu0 %v1966_v29, %s3949_s25  ;;  %v2578_v43 = vrot.slane %v4805_v46, 3  ;;  %v571_v29 = vshrl.u32 %v4590_v40, 16  ;;  %v2595_v40 = vsel %vm2564_vm5, %v2592_v31, %v2594_v47  ;;  %v641_v17 = vrot.slane %v639_v32, 1 }
  0xe3   : > { %2017 = vrot.lane.b32.xlu1 %v1982_v48, %s3949_s25  ;;  %v577_v46 = vrot.slane %v575_v61, 1  ;;  %v2596_v31 = vrot.slane %v4832_v26, 3  ;;  %v3891_v61 = vld [vmem:[%s3996_s19 + $0x88] sm:$0xff]  }
  0xe4   : > { %v660_v15 = vpop.permute.xlu0 %659  ;;  %v642_v23 = vsel %vm502_vm2, %v637_v37, %v641_v17  ;;  %v3892_v37 = vld [vmem:[%s3996_s19 + $0x48] sm:$0xff]  }
  0xe5   : > { %v676_v2 = vpop.permute.xlu1 %675  ;;  %710 = vst.msk [vmem:[#allocation2 + $0x20] sm:$0xff] %vm705_vm8, %v660_v15  ;;  %v4847_v15 = vld [vmem:[%s3996_s19 + $0x50] sm:$0xff]  }
  0xe6   : > { %718 = vst.msk [vmem:[#allocation2 + $0x60] sm:$0xff] %vm705_vm8, %v676_v2  ;;  %2373 = vrot.lane.b32.xlu0 %v2261_v44, %s3950_s26  ;;  %v2579_v2 = vsel %vm2564_vm5, %v2576_v1, %v2578_v43  ;;  %v573_v44 = vor.u32 %v571_v29, %v4619_v4  ;;  %v643_v1 = vshrl.u32 %v4796_v36, 16  ;;  %v2580_v32 = vrot.slane %v4847_v15, 3 }
  0xe7   : > { %2389 = vrot.lane.b32.xlu1 %v2333_v42, %s3950_s26  ;;  %v3918_v42 = vld [vmem:[%s3996_s19 + $0x88] sm:$0xff]   ;;  %v2597_v36 = vsel %vm2564_vm5, %v2594_v47, %v2596_v31  ;;  %v649_v29 = vrot.slane %v647_v55, 1  ;;  %v3895_v55 = vld [vmem:[%s3996_s19 + $0x50] sm:$0xff]  }
  0xe8   : > { %v2609_v51 = vpop.permute.xlu0 %2608  ;;  %v2677_v53 = vld [vmem:[#allocation2 + $0x10] sm:$0xff]  ;;  %371 = vst.msk [vmem:[#allocation2 + $0x88] sm:$0xff] %vm353_vm6, %v3918_v42  ;;  %v578_v6 = vsel %vm502_vm2, %v573_v44, %v577_v46 }
  0xe9   : > { %v2625_v48 = vpop.permute.xlu1 %2624  ;;  %v2685_v39 = vld [vmem:[#allocation2 + $0x50] sm:$0xff]  ;;  %2660 = vst.msk [vmem:[#allocation2 + $0x18] sm:$0xff] %vm2656_vm15, %v2609_v51  ;;  %3673 = vmatprep.mubr.msk.bf16.mxu0 %vm2720_vm7, %v2677_v53  ;;  %v2581_v53 = vsel %vm2564_vm5, %v2578_v43, %v2580_v32 }
  0xea   : > { %2668 = vst.msk [vmem:[#allocation2 + $0x58] sm:$0xff] %vm2656_vm15, %v2625_v48  ;;  %3689 = vmatprep.mubr.msk.bf16.mxu1 %vm2720_vm7, %v2685_v39  ;;  %2375 = vrot.lane.b32.xlu0 %v2270_v14, %s3950_s26  ;;  %v579_v48 = vshrl.u32 %v4808_v12, 16  ;;  %v645_v12 = vor.u32 %v643_v1, %v641_v17  ;;  %v888_v17 = vrot.slane %v3891_v61, 1  ;;  %v3893_v42 = vld [vmem:[%s3996_s19 + $0x90] ss:$0 sps:$4 sm:$0x11]  }
  0xeb   : > { %2391 = vrot.lane.b32.xlu1 %v2342_v63, %s3950_s26  ;;  %v3894_v44 = vld [vmem:[%s3996_s19 + $0x90] sm:$0xff]  }
  0xec   : > { %v662_v24 = vpop.permute.xlu0 %661  ;;  %v650_v47 = vsel %vm502_vm2, %v645_v12, %v649_v29  ;;  %v1128_v56 = vrot.slane %v3894_v44, 1 }
  0xed   : > { %v678_v45 = vpop.permute.xlu1 %677  ;;  %711 = vst.msk [vmem:[#allocation2 + $0x28] sm:$0xff] %vm705_vm8, %v662_v24  ;;  %v890_v24 = vrot.slane %v3893_v42, 1 }
  0xee   : > { %719 = vst.msk [vmem:[#allocation2 + $0x68] sm:$0xff] %vm705_vm8, %v678_v45  ;;  %2614 = vrot.lane.b32.xlu0 %v2579_v2, %s3951_s27  ;;  %v872_v45 = vrot.slane %v3892_v37, 1  ;;  %v1501_v37 = vshll.u32 %v3899_v21, 16 }
  0xef   : > { %2630 = vrot.lane.b32.xlu1 %v2595_v40, %s3951_s27  ;;  %v581_v40 = vor.u32 %v579_v48, %v577_v46  ;;  %v889_v46 = vsel %vm854_vm0, %v886_v28, %v888_v17  ;;  %v891_v28 = vsel %vm854_vm0, %v888_v17, %v890_v24 }
  0xf0   : > { %v901_v39 = vpop.permute.xlu0 %900  ;;  %v2678_v14 = vld [vmem:[#allocation2 + $0x18] sm:$0xff]  ;;  %v873_v1 = vsel %vm854_vm0, %v870_v60, %v872_v45  ;;  %v875_v60 = vsel %vm854_vm0, %v872_v45, %v874_v5  ;;  %v1498_v5 = vshrl.u32 %v3899_v21, 16  ;;  %v1503_v20 = vrot.slane %v1501_v37, 2 }
  0xf1   : > { %v917_v4 = vpop.permute.xlu1 %916  ;;  %v2686_v63 = vld [vmem:[#allocation2 + $0x58] sm:$0xff]  ;;  %951 = vst.msk [vmem:[#allocation2 + $0x20] sm:$0xff] %vm946_vm9, %v901_v39  ;;  %3674 = vmatmul.mubr.msk.bf16.gmra.mrb[4].mxu0 %vm2720_vm7, %v2678_v14  ;;  %v586_v27 = vsel %vm502_vm2, %v581_v40, %v4098_v52 }
  0xf2   : > { %959 = vst.msk [vmem:[#allocation2 + $0x60] sm:$0xff] %vm946_vm9, %v917_v4  ;;  %3690 = vmatmul.mubr.msk.bf16.vlgmr.msra.gmra.mrb[0].mxu1 %vm2720_vm7, %v2686_v63  ;;  %667 = vrot.lane.b32.xlu0 %v578_v6, %s3947_s23  ;;  %v3898_v4 = vld [vmem:[%s3996_s19 + $0x50] sm:$0xff]   ;;  %v3896_v6 = vld [vmem:[%s3996_s19 + $0x98] ss:$0 sps:$4 sm:$0x11]  }
  0xf3   : > { %683 = vrot.lane.b32.xlu1 %v642_v23, %s3947_s23  ;;  %v3897_v23 = vld [vmem:[%s3996_s19 + $0x90] sm:$0xff]   ;;  %v1417_v12 = vshrl.u32 %v3898_v4, 16  ;;  %v1420_v29 = vshll.u32 %v3898_v4, 16  ;;  %v3902_v4 = vld [vmem:[%s3996_s19 + $0x98] ss:$0 sps:$4 sm:$0x33]  }
  0xf4   : > { %v903_v19 = vpop.permute.xlu0 %902  ;;  %v1489_v48 = vshrl.u32 %v3897_v23, 16  ;;  %v1492_v39 = vshll.u32 %v3897_v23, 16  ;;  %v3900_v23 = vld [vmem:[%s3996_s19 + $0x90] sm:$0xff]   ;;  %v3908_v21 = vld [vmem:[%s3996_s19 + $0x98] sm:$0xff]  }
  0xf5   : > { %v919_v51 = vpop.permute.xlu1 %918  ;;  %952 = vst.msk [vmem:[#allocation2 + $0x28] sm:$0xff] %vm946_vm9, %v903_v19  ;;  %v1419_v17 = vrot.slane %v1417_v12, 1  ;;  %v1422_v42 = vrot.slane %v1420_v29, 2  ;;  %v3905_v29 = vld [vmem:[%s3996_s19 + $0xa0] ss:$0 sps:$4 sm:$0x33]  }
  0xf6   : > { %960 = vst.msk [vmem:[#allocation2 + $0x68] sm:$0xff] %vm946_vm9, %v919_v51  ;;  %2616 = vrot.lane.b32.xlu0 %v2581_v53, %s3951_s27  ;;  %v1129_v51 = vsel %vm854_vm0, %v1126_v13, %v1128_v56  ;;  %v1130_v53 = vrot.slane %v3896_v6, 1  ;;  %v1491_v59 = vrot.slane %v1489_v48, 1  ;;  %v1494_v40 = vrot.slane %v1492_v39, 2 }
  0xf7   : > { %2632 = vrot.lane.b32.xlu1 %v2597_v36, %s3951_s27  ;;  %v1112_v36 = vrot.slane %v3895_v55, 1  ;;  %v1743_v55 = vrot.slane %v3900_v23, 2  ;;  %v1745_v39 = vrot.slane %v3902_v4, 2  ;;  %v3913_v23 = vld [vmem:[%s3996_s19 + $0x98] sm:$0xff]  }
  0xf8   : > { %v1141_v2 = vpop.permute.xlu0 %1140  ;;  %v1131_v11 = vsel %vm854_vm0, %v1128_v56, %v1130_v53  ;;  %v1495_v13 = vor.u32 %v1494_v40, %v1491_v59 }
  0xf9   : > { %v1157_v43 = vpop.permute.xlu1 %1156  ;;  %1191 = vst.msk [vmem:[#allocation2 + $0x20] sm:$0xff] %vm1186_vm10, %v1141_v2  ;;  %v1423_v2 = vor.u32 %v1422_v42, %v1419_v17  ;;  %v1744_v48 = vsel %vm1709_vm1, %v1741_v0, %v1743_v55  ;;  %v1746_v0 = vsel %vm1709_vm1, %v1743_v55, %v1745_v39  ;;  %v2356_v42 = vshll.u32 %v3910_v7, 16 }
  0xfa   : > { %1199 = vst.msk [vmem:[#allocation2 + $0x60] sm:$0xff] %vm1186_vm10, %v1157_v43  ;;  %669 = vrot.lane.b32.xlu0 %v586_v27, %s3947_s23  ;;  %v1500_v27 = vrot.slane %v1498_v5, 1 }
  0xfb   : > { %685 = vrot.lane.b32.xlu1 %v650_v47, %s3947_s23  ;;  %v1113_v47 = vsel %vm854_vm0, %v1110_v38, %v1112_v36  ;;  %v1115_v38 = vsel %vm854_vm0, %v1112_v36, %v1114_v22  ;;  %v1424_v9 = vsel %vm1335_vm3, %v4710_v30, %v1423_v2  ;;  %v3901_v22 = vld [vmem:[%s3996_s19 + $0x50] sm:$0xff]   ;;  %v1433_v30 = vsel %vm1335_vm3, %v1423_v2, %v4181_v3  ;;  %v3909_v36 = vld [vmem:[%s3996_s19 + $0x58] sm:$0xff]  }
  0xfc   : > { %v1143_v63 = vpop.permute.xlu0 %1142  ;;  %v1504_v24 = vor.u32 %v1503_v20, %v1500_v27  ;;  %v1727_v56 = vrot.slane %v3901_v22, 2  ;;  %v2272_v40 = vshrl.u32 %v3909_v36, 16  ;;  %v2275_v5 = vshll.u32 %v3909_v36, 16 }
  0xfd   : > { %v1159_v52 = vpop.permute.xlu1 %1158  ;;  %1192 = vst.msk [vmem:[#allocation2 + $0x28] sm:$0xff] %vm1186_vm10, %v1143_v63  ;;  %v2358_v34 = vrot.slane %v2356_v42, 3 }
  0xfe   : > { %1200 = vst.msk [vmem:[#allocation2 + $0x68] sm:$0xff] %vm1186_vm10, %v1159_v52  ;;  %908 = vrot.lane.b32.xlu0 %v873_v1, %s3945_s21  ;;  %v2277_v27 = vrot.slane %v2275_v5, 3 }
  0xff   : > { %924 = vrot.lane.b32.xlu1 %v889_v46, %s3945_s21  ;;  %v1496_v46 = vsel %vm1335_vm3, %v4703_v33, %v1495_v13  ;;  %v1505_v33 = vsel %vm1335_vm3, %v1495_v13, %v1504_v24  ;;  %v2274_v13 = vrot.slane %v2272_v40, 2 }
 0x100   : > { %v1515_v61 = vpop.permute.xlu0 %1514 }
 0x101   : > { %v1531_v14 = vpop.permute.xlu1 %1530  ;;  %1565 = vst.msk [vmem:[#allocation2 + $0x20] sm:$0xff] %vm1560_vm11, %v1515_v61  ;;  %v2344_v61 = vshrl.u32 %v3908_v21, 16  ;;  %v2278_v2 = vor.u32 %v2277_v27, %v2274_v13 }
 0x102   : > { %1573 = vst.msk [vmem:[#allocation2 + $0x60] sm:$0xff] %vm1560_vm11, %v1531_v14  ;;  %910 = vrot.lane.b32.xlu0 %v875_v60, %s3945_s21  ;;  %v1728_v14 = vsel %vm1709_vm1, %v1725_v62, %v1727_v56  ;;  %v3904_v60 = vld [vmem:[%s3996_s19 + $0x58] sm:$0xff]   ;;  %v1730_v62 = vsel %vm1709_vm1, %v1727_v56, %v1729_v25  ;;  %v2353_v25 = vshrl.u32 %v3910_v7, 16 }
 0x103   : > { %926 = vrot.lane.b32.xlu1 %v891_v28, %s3945_s21  ;;  %v3903_v28 = vld [vmem:[%s3996_s19 + $0x98] sm:$0xff]   ;;  %v1967_v59 = vrot.slane %v3904_v60, 2  ;;  %v2346_v18 = vrot.slane %v2344_v61, 2  ;;  %v2279_v16 = vsel %vm2190_vm4, %v4802_v54, %v2278_v2  ;;  %v2288_v4 = vsel %vm2190_vm4, %v2278_v2, %v4264_v58 }
 0x104   : > { %v1517_v43 = vpop.permute.xlu0 %1516  ;;  %v1983_v50 = vrot.slane %v3903_v28, 2 }
 0x105   : > { %v1533_v19 = vpop.permute.xlu1 %1532  ;;  %1566 = vst.msk [vmem:[#allocation2 + $0x28] sm:$0xff] %vm1560_vm11, %v1517_v43 }
 0x106   : > { %1574 = vst.msk [vmem:[#allocation2 + $0x68] sm:$0xff] %vm1560_vm11, %v1533_v19  ;;  %1148 = vrot.lane.b32.xlu0 %v1113_v47, %s3944_s20  ;;  %v1984_v19 = vsel %vm1709_vm1, %v1981_v49, %v1983_v50  ;;  %v1985_v47 = vrot.slane %v3905_v29, 2 }
 0x107   : > { %1164 = vrot.lane.b32.xlu1 %v1129_v51, %s3944_s20  ;;  %v2347_v51 = vshll.u32 %v3908_v21, 16 }
 0x108   : > { %v1756_v44 = vpop.permute.xlu0 %1755  ;;  %v1986_v10 = vsel %vm1709_vm1, %v1983_v50, %v1985_v47 }
 0x109   : > { %v1772_v45 = vpop.permute.xlu1 %1771  ;;  %1806 = vst.msk [vmem:[#allocation2 + $0x20] sm:$0xff] %vm1801_vm12, %v1756_v44  ;;  %v2349_v17 = vrot.slane %v2347_v51, 3 }
 0x10a   : > { %1814 = vst.msk [vmem:[#allocation2 + $0x60] sm:$0xff] %vm1801_vm12, %v1772_v45  ;;  %1150 = vrot.lane.b32.xlu0 %v1115_v38, %s3944_s20  ;;  %v2355_v45 = vrot.slane %v2353_v25, 2 }
 0x10b   : > { %1166 = vrot.lane.b32.xlu1 %v1131_v11, %s3944_s20  ;;  %v1968_v11 = vsel %vm1709_vm1, %v1965_v35, %v1967_v59  ;;  %v2350_v49 = vor.u32 %v2349_v17, %v2346_v18  ;;  %v1970_v35 = vsel %vm1709_vm1, %v1967_v59, %v1969_v57  ;;  %v3914_v57 = vld [vmem:[%s3996_s19 + $0x58] sm:$0xff]  }
 0x10c   : > { %v1758_v1 = vpop.permute.xlu0 %1757  ;;  %v2359_v24 = vor.u32 %v2358_v34, %v2355_v45  ;;  %v2582_v54 = vrot.slane %v3914_v57, 3 }
 0x10d   : > { %v1774_v52 = vpop.permute.xlu1 %1773  ;;  %1807 = vst.msk [vmem:[#allocation2 + $0x28] sm:$0xff] %vm1801_vm12, %v1758_v1  ;;  %v2598_v1 = vrot.slane %v3913_v23, 3 }
 0x10e   : > { %1815 = vst.msk [vmem:[#allocation2 + $0x68] sm:$0xff] %vm1801_vm12, %v1774_v52  ;;  %1522 = vrot.lane.b32.xlu0 %v1424_v9, %s3948_s24  ;;  %v2360_v22 = vsel %vm2190_vm4, %v2350_v49, %v2359_v24  ;;  %v2583_v28 = vsel %vm2564_vm5, %v2580_v32, %v2582_v54 }
 0x10f   : > { %1538 = vrot.lane.b32.xlu1 %v1496_v46, %s3948_s24  ;;  %v2351_v46 = vsel %vm2190_vm4, %v4793_v41, %v2350_v49  ;;  %v3915_v41 = vld [vmem:[%s3996_s19 + $0xa0] ss:$0 sps:$4 sm:$0x77]   ;;  %v2599_v56 = vsel %vm2564_vm5, %v2596_v31, %v2598_v1  ;;  %v5174_v31 = vrot.slane %v4270_v8, 3 }
 0x110   : > { %v1996_v6 = vpop.permute.xlu0 %1995  ;;  %v2600_v58 = vrot.slane %v3915_v41, 3 }
 0x111   : > { %v2012_v63 = vpop.permute.xlu1 %2011  ;;  %2046 = vst.msk [vmem:[#allocation2 + $0x20] sm:$0xff] %vm2041_vm13, %v1996_v6 }
 0x112   : > { %2054 = vst.msk [vmem:[#allocation2 + $0x60] sm:$0xff] %vm2041_vm13, %v2012_v63  ;;  %1524 = vrot.lane.b32.xlu0 %v1433_v30, %s3948_s24  ;;  %v2601_v39 = vsel %vm2564_vm5, %v2598_v1, %v2600_v58  ;;  %v5076_v1 = vld [vmem:[%s5171_s2] ss:$0 sm:$0xff] }
 0x113   : > { %1540 = vrot.lane.b32.xlu1 %v1505_v33, %s3948_s24 }
 0x114   : > { %v1998_v12 = vpop.permute.xlu0 %1997 }
 0x115   : > { %v2014_v3 = vpop.permute.xlu1 %2013  ;;  %2047 = vst.msk [vmem:[#allocation2 + $0x28] sm:$0xff] %vm2041_vm13, %v1998_v12 }
 0x116   : > { %2055 = vst.msk [vmem:[#allocation2 + $0x68] sm:$0xff] %vm2041_vm13, %v2014_v3  ;;  %1763 = vrot.lane.b32.xlu0 %v1728_v14, %s3946_s22  ;;  %v2585_v3 = vsel %vm2564_vm5, %v2582_v54, %v5174_v31 }
 0x117   : > { %1779 = vrot.lane.b32.xlu1 %v1744_v48, %s3946_s22 }
 0x118   : > { %v2370_v37 = vpop.permute.xlu0 %2369 }
 0x119   : > { %v2386_v53 = vpop.permute.xlu1 %2385  ;;  %2420 = vst.msk [vmem:[#allocation2 + $0x20] sm:$0xff] %vm2415_vm14, %v2370_v37 }
 0x11a   : > { %2428 = vst.msk [vmem:[#allocation2 + $0x60] sm:$0xff] %vm2415_vm14, %v2386_v53  ;;  %1765 = vrot.lane.b32.xlu0 %v1730_v62, %s3946_s22 }
 0x11b   : > { %1781 = vrot.lane.b32.xlu1 %v1746_v0, %s3946_s22 }
 0x11c   : > { %v2372_v20 = vpop.permute.xlu0 %2371 }
 0x11d   : > { %v2388_v43 = vpop.permute.xlu1 %2387  ;;  %2421 = vst.msk [vmem:[#allocation2 + $0x28] sm:$0xff] %vm2415_vm14, %v2372_v20 }
 0x11e   : > { %2429 = vst.msk [vmem:[#allocation2 + $0x68] sm:$0xff] %vm2415_vm14, %v2388_v43  ;;  %2003 = vrot.lane.b32.xlu0 %v1968_v11, %s3949_s25 }
 0x11f   : > { %2019 = vrot.lane.b32.xlu1 %v1984_v19, %s3949_s25 }
 0x120   : > { %v2611_v44 = vpop.permute.xlu0 %2610 }
 0x121   : > { %v2627_v38 = vpop.permute.xlu1 %2626  ;;  %2661 = vst.msk [vmem:[#allocation2 + $0x20] sm:$0xff] %vm2656_vm15, %v2611_v44 }
 0x122   : > { %2669 = vst.msk [vmem:[#allocation2 + $0x60] sm:$0xff] %vm2656_vm15, %v2627_v38  ;;  %2005 = vrot.lane.b32.xlu0 %v1970_v35, %s3949_s25 }
 0x123   : > { %2021 = vrot.lane.b32.xlu1 %v1986_v10, %s3949_s25 }
 0x124   : > { %v664_v9 = vpop.permute.xlu0 %663 }
 0x125   : > { %v680_v52 = vpop.permute.xlu1 %679  ;;  %712 = vst.msk [vmem:[#allocation2 + $0x30] sm:$0xff] %vm705_vm8, %v664_v9 }
 0x126   : > { %720 = vst.msk [vmem:[#allocation2 + $0x70] sm:$0xff] %vm705_vm8, %v680_v52  ;;  %2377 = vrot.lane.b32.xlu0 %v2279_v16, %s3950_s26 }
 0x127   : > { %2393 = vrot.lane.b32.xlu1 %v2351_v46, %s3950_s26 }
 0x128   : > { %v2613_v63 = vpop.permute.xlu0 %2612  ;;  %v2679_v30 = vld [vmem:[#allocation2 + $0x20] sm:$0xff] }
 0x129   : > { %v2629_v33 = vpop.permute.xlu1 %2628  ;;  %v2687_v55 = vld [vmem:[#allocation2 + $0x60] sm:$0xff]  ;;  %2662 = vst.msk [vmem:[#allocation2 + $0x28] sm:$0xff] %vm2656_vm15, %v2613_v63  ;;  %3677 = vmatprep.mubr.msk.bf16.mxu0 %vm2720_vm7, %v2679_v30 }
 0x12a   : > { %2670 = vst.msk [vmem:[#allocation2 + $0x68] sm:$0xff] %vm2656_vm15, %v2629_v33  ;;  %3693 = vmatprep.mubr.msk.bf16.mxu1 %vm2720_vm7, %v2687_v55  ;;  %2379 = vrot.lane.b32.xlu0 %v2288_v4, %s3950_s26 }
 0x12b   : > { %2395 = vrot.lane.b32.xlu1 %v2360_v22, %s3950_s26 }
 0x12c   : > { %v666_v48 = vpop.permute.xlu0 %665 }
 0x12d   : > { %v682_v6 = vpop.permute.xlu1 %681  ;;  %713 = vst.msk [vmem:[#allocation2 + $0x38] sm:$0xff] %vm705_vm8, %v666_v48 }
 0x12e   : > { %721 = vst.msk [vmem:[#allocation2 + $0x78] sm:$0xff] %vm705_vm8, %v682_v6  ;;  %2618 = vrot.lane.b32.xlu0 %v2583_v28, %s3951_s27 }
 0x12f   : > { %2634 = vrot.lane.b32.xlu1 %v2599_v56, %s3951_s27 }
 0x130   : > { %v905_v15 = vpop.permute.xlu0 %904  ;;  %v2680_v32 = vld [vmem:[#allocation2 + $0x28] sm:$0xff] }
 0x131   : > { %v921_v26 = vpop.permute.xlu1 %920  ;;  %v2688_v21 = vld [vmem:[#allocation2 + $0x68] sm:$0xff]  ;;  %953 = vst.msk [vmem:[#allocation2 + $0x30] sm:$0xff] %vm946_vm9, %v905_v15  ;;  %3678 = vmatmul.mubr.msk.bf16.gmra.mrb[8].mxu0 %vm2720_vm7, %v2680_v32 }
 0x132   : > { %961 = vst.msk [vmem:[#allocation2 + $0x70] sm:$0xff] %vm946_vm9, %v921_v26  ;;  %3694 = vmatmul.mubr.msk.bf16.gmra.mrb[4].mxu1 %vm2720_vm7, %v2688_v21  ;;  %2620 = vrot.lane.b32.xlu0 %v2585_v3, %s3951_s27 }
 0x133   : > { %2636 = vrot.lane.b32.xlu1 %v2601_v39, %s3951_s27 }
 0x134   : > { %v907_v8 = vpop.permute.xlu0 %906 }
 0x135   : > { %v923_v14 = vpop.permute.xlu1 %922  ;;  %954 = vst.msk [vmem:[#allocation2 + $0x38] sm:$0xff] %vm946_vm9, %v907_v8 }
 0x136   : > { %962 = vst.msk [vmem:[#allocation2 + $0x78] sm:$0xff] %vm946_vm9, %v923_v14 }
 0x138   : > { %v1145_v36 = vpop.permute.xlu0 %1144 }
 0x139   : > { %v1161_v60 = vpop.permute.xlu1 %1160  ;;  %1193 = vst.msk [vmem:[#allocation2 + $0x30] sm:$0xff] %vm1186_vm10, %v1145_v36 }
 0x13a   : > { %1201 = vst.msk [vmem:[#allocation2 + $0x70] sm:$0xff] %vm1186_vm10, %v1161_v60 }
 0x13c   : > { %v1147_v50 = vpop.permute.xlu0 %1146 }
 0x13d   : > { %v1163_v12 = vpop.permute.xlu1 %1162  ;;  %1194 = vst.msk [vmem:[#allocation2 + $0x38] sm:$0xff] %vm1186_vm10, %v1147_v50 }
 0x13e   : > { %1202 = vst.msk [vmem:[#allocation2 + $0x78] sm:$0xff] %vm1186_vm10, %v1163_v12 }
 0x140   : > { %v1519_v0 = vpop.permute.xlu0 %1518 }
 0x141   : > { %v1535_v29 = vpop.permute.xlu1 %1534  ;;  %1567 = vst.msk [vmem:[#allocation2 + $0x30] sm:$0xff] %vm1560_vm11, %v1519_v0 }
 0x142   : > { %1575 = vst.msk [vmem:[#allocation2 + $0x70] sm:$0xff] %vm1560_vm11, %v1535_v29 }
 0x144   : > { %v1521_v51 = vpop.permute.xlu0 %1520 }
 0x145   : > { %v1537_v61 = vpop.permute.xlu1 %1536  ;;  %1568 = vst.msk [vmem:[#allocation2 + $0x38] sm:$0xff] %vm1560_vm11, %v1521_v51 }
 0x146   : > { %1576 = vst.msk [vmem:[#allocation2 + $0x78] sm:$0xff] %vm1560_vm11, %v1537_v61 }
 0x148   : > { %v1760_v53 = vpop.permute.xlu0 %1759 }
 0x149   : > { %v1776_v7 = vpop.permute.xlu1 %1775  ;;  %1808 = vst.msk [vmem:[#allocation2 + $0x30] sm:$0xff] %vm1801_vm12, %v1760_v53 }
 0x14a   : > { %1816 = vst.msk [vmem:[#allocation2 + $0x70] sm:$0xff] %vm1801_vm12, %v1776_v7 }
 0x14c   : > { %v1762_v59 = vpop.permute.xlu0 %1761 }
 0x14d   : > { %v1778_v62 = vpop.permute.xlu1 %1777  ;;  %1809 = vst.msk [vmem:[#allocation2 + $0x38] sm:$0xff] %vm1801_vm12, %v1762_v59 }
 0x14e   : > { %1817 = vst.msk [vmem:[#allocation2 + $0x78] sm:$0xff] %vm1801_vm12, %v1778_v62 }
 0x150   : > { %v2000_v5 = vpop.permute.xlu0 %1999 }
 0x151   : > { %v2016_v40 = vpop.permute.xlu1 %2015  ;;  %2048 = vst.msk [vmem:[#allocation2 + $0x30] sm:$0xff] %vm2041_vm13, %v2000_v5 }
 0x152   : > { %2056 = vst.msk [vmem:[#allocation2 + $0x70] sm:$0xff] %vm2041_vm13, %v2016_v40 }
 0x154   : > { %v2002_v19 = vpop.permute.xlu0 %2001 }
 0x155   : > { %v2018_v37 = vpop.permute.xlu1 %2017  ;;  %2049 = vst.msk [vmem:[#allocation2 + $0x38] sm:$0xff] %vm2041_vm13, %v2002_v19 }
 0x156   : > { %2057 = vst.msk [vmem:[#allocation2 + $0x78] sm:$0xff] %vm2041_vm13, %v2018_v37 }
 0x158   : > { %v2374_v18 = vpop.permute.xlu0 %2373 }
 0x159   : > { %v2390_v47 = vpop.permute.xlu1 %2389  ;;  %2422 = vst.msk [vmem:[#allocation2 + $0x30] sm:$0xff] %vm2415_vm14, %v2374_v18 }
 0x15a   : > { %2430 = vst.msk [vmem:[#allocation2 + $0x70] sm:$0xff] %vm2415_vm14, %v2390_v47 }
 0x15c   : > { %v2376_v25 = vpop.permute.xlu0 %2375 }
 0x15d   : > { %v2392_v17 = vpop.permute.xlu1 %2391  ;;  %2423 = vst.msk [vmem:[#allocation2 + $0x38] sm:$0xff] %vm2415_vm14, %v2376_v25 }
 0x15e   : > { %2431 = vst.msk [vmem:[#allocation2 + $0x78] sm:$0xff] %vm2415_vm14, %v2392_v17 }
 0x160   : > { %v2615_v43 = vpop.permute.xlu0 %2614 }
 0x161   : > { %v2631_v42 = vpop.permute.xlu1 %2630  ;;  %2663 = vst.msk [vmem:[#allocation2 + $0x30] sm:$0xff] %vm2656_vm15, %v2615_v43 }
 0x162   : > { %2671 = vst.msk [vmem:[#allocation2 + $0x70] sm:$0xff] %vm2656_vm15, %v2631_v42 }
 0x164   : > { %v668_v13 = vpop.permute.xlu0 %667 }
 0x165   : > { %v684_v11 = vpop.permute.xlu1 %683  ;;  %714 = vst.msk [vmem:[#allocation2 + $0x40] sm:$0xff] %vm705_vm8, %v668_v13 }
 0x166   : > { %722 = vst.msk [vmem:[#allocation2 + $0x80] sm:$0xff] %vm705_vm8, %v684_v11 }
 0x168   : > { %v2617_v10 = vpop.permute.xlu0 %2616  ;;  %v2681_v49 = vld [vmem:[#allocation2 + $0x30] sm:$0xff] }
 0x169   : > { %v2633_v27 = vpop.permute.xlu1 %2632  ;;  %v2689_v20 = vld [vmem:[#allocation2 + $0x70] sm:$0xff]  ;;  %2664 = vst.msk [vmem:[#allocation2 + $0x38] sm:$0xff] %vm2656_vm15, %v2617_v10  ;;  %3681 = vmatprep.mubr.msk.bf16.mxu0 %vm2720_vm7, %v2681_v49 }
 0x16a   : > { %2672 = vst.msk [vmem:[#allocation2 + $0x78] sm:$0xff] %vm2656_vm15, %v2633_v27  ;;  %3697 = vmatprep.mubr.msk.bf16.mxu1 %vm2720_vm7, %v2689_v20 }
 0x16c   : > { %v670_v34 = vpop.permute.xlu0 %669 }
 0x16d   : > { %v686_v45 = vpop.permute.xlu1 %685  ;;  %715 = vst.msk [vmem:[#allocation2 + $0x48] sm:$0xff] %vm705_vm8, %v670_v34 }
 0x16e   : > { %723 = vst.msk [vmem:[#allocation2 + $0x88] sm:$0xff] %vm705_vm8, %v686_v45 }
 0x170   : > { %v909_v2 = vpop.permute.xlu0 %908  ;;  %v2682_v44 = vld [vmem:[#allocation2 + $0x38] sm:$0xff] }
 0x171   : > { %v925_v38 = vpop.permute.xlu1 %924  ;;  %v2690_v35 = vld [vmem:[#allocation2 + $0x78] sm:$0xff]  ;;  %955 = vst.msk [vmem:[#allocation2 + $0x40] sm:$0xff] %vm946_vm9, %v909_v2  ;;  %3682 = vmatmul.mubr.msk.bf16.gmra.mrb[12].mxu0 %vm2720_vm7, %v2682_v44 }
 0x172   : > { %963 = vst.msk [vmem:[#allocation2 + $0x80] sm:$0xff] %vm946_vm9, %v925_v38  ;;  %3698 = vmatmul.mubr.msk.bf16.gmra.mrb[8].mxu1 %vm2720_vm7, %v2690_v35 }
 0x174   : > { %v911_v24 = vpop.permute.xlu0 %910 }
 0x175   : > { %v927_v46 = vpop.permute.xlu1 %926  ;;  %956 = vst.msk [vmem:[#allocation2 + $0x48] sm:$0xff] %vm946_vm9, %v911_v24 }
 0x176   : > { %964 = vst.msk [vmem:[#allocation2 + $0x88] sm:$0xff] %vm946_vm9, %v927_v46 }
 0x178   : > { %v1149_v52 = vpop.permute.xlu0 %1148 }
 0x179   : > { %v1165_v23 = vpop.permute.xlu1 %1164  ;;  %1195 = vst.msk [vmem:[#allocation2 + $0x40] sm:$0xff] %vm1186_vm10, %v1149_v52 }
 0x17a   : > { %1203 = vst.msk [vmem:[#allocation2 + $0x80] sm:$0xff] %vm1186_vm10, %v1165_v23 }
 0x17c   : > { %v1151_v57 = vpop.permute.xlu0 %1150 }
 0x17d   : > { %v1167_v16 = vpop.permute.xlu1 %1166  ;;  %1196 = vst.msk [vmem:[#allocation2 + $0x48] sm:$0xff] %vm1186_vm10, %v1151_v57 }
 0x17e   : > { %1204 = vst.msk [vmem:[#allocation2 + $0x88] sm:$0xff] %vm1186_vm10, %v1167_v16 }
 0x180   : > { %v1523_v22 = vpop.permute.xlu0 %1522 }
 0x181   : > { %v1539_v9 = vpop.permute.xlu1 %1538  ;;  %1569 = vst.msk [vmem:[#allocation2 + $0x40] sm:$0xff] %vm1560_vm11, %v1523_v22 }
 0x182   : > { %1577 = vst.msk [vmem:[#allocation2 + $0x80] sm:$0xff] %vm1560_vm11, %v1539_v9 }
 0x184   : > { %v1525_v55 = vpop.permute.xlu0 %1524 }
 0x185   : > { %v1541_v41 = vpop.permute.xlu1 %1540  ;;  %v3671_v33 = vpop.f32.mrb[0].mxu0  ;;  %1570 = vst.msk [vmem:[#allocation2 + $0x48] sm:$0xff] %vm1560_vm11, %v1525_v55 }
 0x186   : > { %1578 = vst.msk [vmem:[#allocation2 + $0x88] sm:$0xff] %vm1560_vm11, %v1541_v41  ;;  %v2822_v4 = vadd.f32 %v3671_v33, %v5076_v1  ;;  %v2813_v54 = vpop.f32.mrb[1].mxu0 }
 0x187   : > { %v2814_v63 = vadd.f32 %v5076_v1, %v2813_v54  ;;  %v3672_v30 = vpop.f32.mrb[2].mxu0 }
 0x188   : > { %v2825_v56 = vadd.f32 %v3672_v30, %v5076_v1  ;;  %v2816_v58 = vpop.f32.mrb[3].mxu0  ;;  %v2958_v48 = vmax.f32 %v2822_v4, 0.0  ;;  %v1764_v26 = vpop.permute.xlu0 %1763 }
 0x189   : > { %v2817_v6 = vadd.f32 %v5076_v1, %v2816_v58  ;;  %v1780_v28 = vpop.permute.xlu1 %1779  ;;  %v2956_v21 = vmax.f32 %v2814_v63, 0.0  ;;  %1810 = vst.msk [vmem:[#allocation2 + $0x40] sm:$0xff] %vm1801_vm12, %v1764_v26 }
 0x18a   : > { %v2959_v39 = vmax.f32 %v2825_v56, 0.0  ;;  %1818 = vst.msk [vmem:[#allocation2 + $0x80] sm:$0xff] %vm1801_vm12, %v1780_v28 }
 0x18b   : > { %v2957_v31 = vmax.f32 %v2817_v6, 0.0 }
 0x18c   : > { %v3543_v3 = vpack.c.bf16 %v2959_v39, %v2958_v48  ;;  %v1766_v14 = vpop.permute.xlu0 %1765 }
 0x18d   : > { %v3538_v15 = vpack.c.bf16 %v2957_v31, %v2956_v21  ;;  %v1782_v32 = vpop.permute.xlu1 %1781  ;;  %1811 = vst.msk [vmem:[#allocation2 + $0x48] sm:$0xff] %vm1801_vm12, %v1766_v14 }
 0x18e   : > { %3625 = vst [vmem:[%s5089_s16 + $0x8] sm:$0xff] %v3543_v3   ;;  %1819 = vst.msk [vmem:[#allocation2 + $0x88] sm:$0xff] %vm1801_vm12, %v1782_v32 }
 0x18f   : > { %3539 = vst [vmem:[%s5089_s16] sm:$0xff] %v3538_v15  }
 0x190   : > { %v2004_v60 = vpop.permute.xlu0 %2003 }
 0x191   : > { %v2020_v8 = vpop.permute.xlu1 %2019  ;;  %2050 = vst.msk [vmem:[#allocation2 + $0x40] sm:$0xff] %vm2041_vm13, %v2004_v60 }
 0x192   : > { %2058 = vst.msk [vmem:[#allocation2 + $0x80] sm:$0xff] %vm2041_vm13, %v2020_v8 }
 0x194   : > { %v2006_v12 = vpop.permute.xlu0 %2005 }
 0x195   : > { %v2022_v36 = vpop.permute.xlu1 %2021  ;;  %2051 = vst.msk [vmem:[#allocation2 + $0x48] sm:$0xff] %vm2041_vm13, %v2006_v12 }
 0x196   : > { %2059 = vst.msk [vmem:[#allocation2 + $0x88] sm:$0xff] %vm2041_vm13, %v2022_v36 }
 0x198   : > { %v2378_v29 = vpop.permute.xlu0 %2377 }
 0x199   : > { %v2394_v50 = vpop.permute.xlu1 %2393  ;;  %2424 = vst.msk [vmem:[#allocation2 + $0x40] sm:$0xff] %vm2415_vm14, %v2378_v29 }
 0x19a   : > { %2432 = vst.msk [vmem:[#allocation2 + $0x80] sm:$0xff] %vm2415_vm14, %v2394_v50 }
 0x19c   : > { %v2380_v61 = vpop.permute.xlu0 %2379 }
 0x19d   : > { %v2396_v0 = vpop.permute.xlu1 %2395  ;;  %2425 = vst.msk [vmem:[#allocation2 + $0x48] sm:$0xff] %vm2415_vm14, %v2380_v61 }
 0x19e   : > { %2433 = vst.msk [vmem:[#allocation2 + $0x88] sm:$0xff] %vm2415_vm14, %v2396_v0 }
 0x1a0   : > { %v2619_v7 = vpop.permute.xlu0 %2618 }
 0x1a1   : > { %v2635_v51 = vpop.permute.xlu1 %2634  ;;  %2665 = vst.msk [vmem:[#allocation2 + $0x40] sm:$0xff] %vm2656_vm15, %v2619_v7 }
 0x1a2   : > { %2673 = vst.msk [vmem:[#allocation2 + $0x80] sm:$0xff] %vm2656_vm15, %v2635_v51 }
 0x1a4   : > { %v2621_v62 = vpop.permute.xlu0 %2620 }
 0x1a5   : > { %v2637_v53 = vpop.permute.xlu1 %2636  ;;  %2666 = vst.msk [vmem:[#allocation2 + $0x48] sm:$0xff] %vm2656_vm15, %v2621_v62 }
 0x1a6   : > { %2674 = vst.msk [vmem:[#allocation2 + $0x88] sm:$0xff] %vm2656_vm15, %v2637_v53 }
 0x1a8   : > { %v2683_v40 = vld [vmem:[#allocation2 + $0x40] sm:$0xff] }
 0x1a9   : > { %v2691_v59 = vld [vmem:[#allocation2 + $0x80] sm:$0xff]  ;;  %3685 = vmatprep.mubr.msk.bf16.mxu0 %vm2720_vm7, %v2683_v40 }
 0x1aa   : > { %3701 = vmatprep.mubr.msk.bf16.mxu1 %vm2720_vm7, %v2691_v59 }
 0x1ac   : > { %v2684_v37 = vld [vmem:[#allocation2 + $0x48] sm:$0xff] }
 0x1ad   : > { %v2692_v5 = vld [vmem:[#allocation2 + $0x88] sm:$0xff]  ;;  %3686 = vmatmul.mubr.msk.bf16.gmra.mrb[16].mxu0 %vm2720_vm7, %v2684_v37 }
 0x1ae   : > { %3702 = vmatmul.mubr.msk.bf16.gmra.mrb[12].mxu1 %vm2720_vm7, %v2692_v5 }
 0x1c4   : > { %v3675_v47 = vpop.f32.mrb[4].mxu0 }
 0x1c5   : > { %v3691_v19 = vpop.f32.mrb[0].mxu1  ;;  %v2838_v25 = vadd.f32 %v3675_v47, %v5076_v1  ;;  %v2829_v42 = vpop.f32.mrb[5].mxu0 }
 0x1c6   : > { %v2902_v18 = vadd.f32 %v3691_v19, %v5076_v1  ;;  %v2893_v17 = vpop.f32.mrb[1].mxu1  ;;  %v2830_v13 = vadd.f32 %v5076_v1, %v2829_v42  ;;  %v3676_v27 = vpop.f32.mrb[6].mxu0 }
 0x1c7   : > { %v2894_v43 = vadd.f32 %v5076_v1, %v2893_v17  ;;  %v3692_v11 = vpop.f32.mrb[2].mxu1  ;;  %v2841_v49 = vadd.f32 %v3676_v27, %v5076_v1  ;;  %v2832_v45 = vpop.f32.mrb[7].mxu0  ;;  %v2962_v44 = vmax.f32 %v2838_v25, 0.0 }
 0x1c8   : > { %v2905_v20 = vadd.f32 %v3692_v11, %v5076_v1  ;;  %v2896_v10 = vpop.f32.mrb[3].mxu1  ;;  %v2978_v38 = vmax.f32 %v2902_v18, 0.0  ;;  %v2833_v2 = vadd.f32 %v5076_v1, %v2832_v45  ;;  %v2960_v52 = vmax.f32 %v2830_v13, 0.0 }
 0x1c9   : > { %v2897_v34 = vadd.f32 %v5076_v1, %v2896_v10  ;;  %v2976_v46 = vmax.f32 %v2894_v43, 0.0  ;;  %v2963_v24 = vmax.f32 %v2841_v49, 0.0 }
 0x1ca   : > { %v2979_v35 = vmax.f32 %v2905_v20, 0.0  ;;  %v2961_v57 = vmax.f32 %v2833_v2, 0.0 }
 0x1cb   : > { %v2977_v23 = vmax.f32 %v2897_v34, 0.0  ;;  %v3553_v9 = vpack.c.bf16 %v2963_v24, %v2962_v44 }
 0x1cc   : > { %v3593_v16 = vpack.c.bf16 %v2979_v35, %v2978_v38  ;;  %v3548_v41 = vpack.c.bf16 %v2961_v57, %v2960_v52 }
 0x1cd   : > { %v3588_v22 = vpack.c.bf16 %v2977_v23, %v2976_v46  ;;  %3627 = vst [vmem:[%s5089_s16 + $0x18] sm:$0xff] %v3553_v9  }
 0x1ce   : > { %3635 = vst [vmem:[%s5089_s16 + $0x58] sm:$0xff] %v3593_v16   ;;  %3626 = vst [vmem:[%s5089_s16 + $0x10] sm:$0xff] %v3548_v41  }
 0x1cf   : > { %3634 = vst [vmem:[%s5089_s16 + $0x50] sm:$0xff] %v3588_v22  }
 0x204   : > { %v3679_v55 = vpop.f32.mrb[8].mxu0 }
 0x205   : > { %v3695_v33 = vpop.f32.mrb[4].mxu1  ;;  %v2854_v63 = vadd.f32 %v3679_v55, %v5076_v1  ;;  %v2845_v30 = vpop.f32.mrb[9].mxu0 }
 0x206   : > { %v2918_v4 = vadd.f32 %v3695_v33, %v5076_v1  ;;  %v2909_v54 = vpop.f32.mrb[5].mxu1  ;;  %v2846_v6 = vadd.f32 %v5076_v1, %v2845_v30  ;;  %v3680_v28 = vpop.f32.mrb[10].mxu0 }
 0x207   : > { %v2910_v56 = vadd.f32 %v5076_v1, %v2909_v54  ;;  %v3696_v58 = vpop.f32.mrb[6].mxu1  ;;  %v2857_v26 = vadd.f32 %v3680_v28, %v5076_v1  ;;  %v2848_v21 = vpop.f32.mrb[11].mxu0  ;;  %v2966_v14 = vmax.f32 %v2854_v63, 0.0 }
 0x208   : > { %v2921_v48 = vadd.f32 %v3696_v58, %v5076_v1  ;;  %v2912_v39 = vpop.f32.mrb[7].mxu1  ;;  %v2982_v3 = vmax.f32 %v2918_v4, 0.0  ;;  %v2849_v32 = vadd.f32 %v5076_v1, %v2848_v21  ;;  %v2964_v12 = vmax.f32 %v2846_v6, 0.0 }
 0x209   : > { %v2913_v31 = vadd.f32 %v5076_v1, %v2912_v39  ;;  %v2980_v8 = vmax.f32 %v2910_v56, 0.0  ;;  %v2967_v60 = vmax.f32 %v2857_v26, 0.0 }
 0x20a   : > { %v2983_v15 = vmax.f32 %v2921_v48, 0.0  ;;  %v2965_v29 = vmax.f32 %v2849_v32, 0.0 }
 0x20b   : > { %v2981_v36 = vmax.f32 %v2913_v31, 0.0  ;;  %v3563_v0 = vpack.c.bf16 %v2967_v60, %v2966_v14 }
 0x20c   : > { %v3603_v50 = vpack.c.bf16 %v2983_v15, %v2982_v3  ;;  %v3558_v51 = vpack.c.bf16 %v2965_v29, %v2964_v12 }
 0x20d   : > { %v3598_v61 = vpack.c.bf16 %v2981_v36, %v2980_v8  ;;  %3629 = vst [vmem:[%s5089_s16 + $0x28] sm:$0xff] %v3563_v0  }
 0x20e   : > { %3637 = vst [vmem:[%s5089_s16 + $0x68] sm:$0xff] %v3603_v50   ;;  %3628 = vst [vmem:[%s5089_s16 + $0x20] sm:$0xff] %v3558_v51  }
 0x20f   : > { %3636 = vst [vmem:[%s5089_s16 + $0x60] sm:$0xff] %v3598_v61  }
 0x244   : > { %v3683_v53 = vpop.f32.mrb[12].mxu0 }
 0x245   : > { %v3699_v7 = vpop.f32.mrb[8].mxu1  ;;  %v2870_v40 = vadd.f32 %v3683_v53, %v5076_v1  ;;  %v2861_v5 = vpop.f32.mrb[13].mxu0 }
 0x246   : > { %v2934_v62 = vadd.f32 %v3699_v7, %v5076_v1  ;;  %v2925_v59 = vpop.f32.mrb[9].mxu1  ;;  %v2862_v47 = vadd.f32 %v5076_v1, %v2861_v5  ;;  %v3684_v18 = vpop.f32.mrb[14].mxu0 }
 0x247   : > { %v2926_v37 = vadd.f32 %v5076_v1, %v2925_v59  ;;  %v3700_v19 = vpop.f32.mrb[10].mxu1  ;;  %v2873_v42 = vadd.f32 %v3684_v18, %v5076_v1  ;;  %v2864_v43 = vpop.f32.mrb[15].mxu0  ;;  %v2970_v10 = vmax.f32 %v2870_v40, 0.0 }
 0x248   : > { %v2937_v17 = vadd.f32 %v3700_v19, %v5076_v1  ;;  %v2928_v25 = vpop.f32.mrb[11].mxu1  ;;  %v2986_v13 = vmax.f32 %v2934_v62, 0.0  ;;  %v2865_v20 = vadd.f32 %v5076_v1, %v2864_v43  ;;  %v2968_v38 = vmax.f32 %v2862_v47, 0.0 }
 0x249   : > { %v2929_v11 = vadd.f32 %v5076_v1, %v2928_v25  ;;  %v2984_v49 = vmax.f32 %v2926_v37, 0.0  ;;  %v2971_v45 = vmax.f32 %v2873_v42, 0.0 }
 0x24a   : > { %v2987_v27 = vmax.f32 %v2937_v17, 0.0  ;;  %v2969_v2 = vmax.f32 %v2865_v20, 0.0 }
 0x24b   : > { %v2985_v34 = vmax.f32 %v2929_v11, 0.0  ;;  %v3573_v44 = vpack.c.bf16 %v2971_v45, %v2970_v10 }
 0x24c   : > { %v3613_v35 = vpack.c.bf16 %v2987_v27, %v2986_v13  ;;  %v3568_v24 = vpack.c.bf16 %v2969_v2, %v2968_v38 }
 0x24d   : > { %v3608_v46 = vpack.c.bf16 %v2985_v34, %v2984_v49  ;;  %3631 = vst [vmem:[%s5089_s16 + $0x38] sm:$0xff] %v3573_v44  }
 0x24e   : > { %3639 = vst [vmem:[%s5089_s16 + $0x78] sm:$0xff] %v3613_v35   ;;  %3630 = vst [vmem:[%s5089_s16 + $0x30] sm:$0xff] %v3568_v24  }
 0x24f   : > { %3638 = vst [vmem:[%s5089_s16 + $0x70] sm:$0xff] %v3608_v46  }
 0x280   : > { %v3687_v52 = vpop.f32.mrb[16].mxu0 }
 0x281   : > { %v3703_v23 = vpop.f32.mrb[12].mxu1  ;;  %v2886_v9 = vadd.f32 %v3687_v52, %v5076_v1  ;;  %v2877_v22 = vpop.f32.mrb[17].mxu0 }
 0x282   : > { %v2950_v16 = vadd.f32 %v3703_v23, %v5076_v1  ;;  %v2941_v57 = vpop.f32.mrb[13].mxu1  ;;  %v2878_v55 = vadd.f32 %v5076_v1, %v2877_v22  ;;  %v3688_v4 = vpop.f32.mrb[18].mxu0 }
 0x283   : > { %v2942_v41 = vadd.f32 %v5076_v1, %v2941_v57  ;;  %v3704_v33 = vpop.f32.mrb[14].mxu1  ;;  %v2889_v30 = vadd.f32 %v3688_v4, %v5076_v1  ;;  %v2880_v56 = vpop.f32.mrb[19].mxu0  ;;  %v2974_v39 = vmax.f32 %v2886_v9, 0.0 }
 0x284   : > { %v2953_v54 = vadd.f32 %v3704_v33, %v5076_v1  ;;  %v2944_v63 = vpop.f32.mrb[15].mxu1  ;;  %v2990_v6 = vmax.f32 %v2950_v16, 0.0  ;;  %v2881_v48 = vadd.f32 %v5076_v1, %v2880_v56  ;;  %v2972_v3 = vmax.f32 %v2878_v55, 0.0 }
 0x285   : > { %v2945_v58 = vadd.f32 %v5076_v1, %v2944_v63  ;;  %v2988_v26 = vmax.f32 %v2942_v41, 0.0  ;;  %v2975_v21 = vmax.f32 %v2889_v30, 0.0 }
 0x286   : > { %v2991_v28 = vmax.f32 %v2953_v54, 0.0  ;;  %v2973_v32 = vmax.f32 %v2881_v48, 0.0 }
 0x287   : > { %v2989_v31 = vmax.f32 %v2945_v58, 0.0  ;;  %v3583_v14 = vpack.c.bf16 %v2975_v21, %v2974_v39 }
 0x288   : > { %v3623_v15 = vpack.c.bf16 %v2991_v28, %v2990_v6  ;;  %v3578_v60 = vpack.c.bf16 %v2973_v32, %v2972_v3 }
 0x289   : > { %v3618_v8 = vpack.c.bf16 %v2989_v31, %v2988_v26  ;;  %3633 = vst [vmem:[%s5089_s16 + $0x48] sm:$0xff] %v3583_v14  }
 0x28a   : > { %3641 = vst [vmem:[%s5089_s16 + $0x88] sm:$0xff] %v3623_v15   ;;  %3632 = vst [vmem:[%s5089_s16 + $0x40] sm:$0xff] %v3578_v60  }
 0x28b   : > { %3640 = vst [vmem:[%s5089_s16 + $0x80] sm:$0xff] %v3618_v8  }
 0x28c PF: > { %s13_s14 = sadd.s32 1, %s3942_s14   ;;  %s5175_s12 = smov %s3938_s13 }
 0x28d   : > { %p10_p5 = scmp.ge.s32.totalorder %s13_s14, 4   ;;  %s5176_s13 = smov %s5178_s15 }
 0x28f   :  { %12 = sbr.rel (!%p10_p5) target bundleno = 2 (0x2), region = 62 }

</bundles_post_ra>
